<compile_context>
chip_gen: v7x
topology: tpu7x:2x2x1
jax: 0.10.0
libtpu: 0.0.40
codegen_flags: <defaults>
</compile_context>

<pallas_src>
import numpy as np

import jax
import jax.numpy as jnp
from jax.experimental import pallas as pl
from jax.experimental.pallas import tpu as pltpu

INPUT_SIZE = 5
HIDDEN_SIZE = 10
OUTPUT_SIZE = 1
LANE = 128  # lane-dense padding for hidden state / output


def _rnn_ts_kernel(x_ref, wxh_ref, whh_ref, bh_ref, wxo_ref, who_ref, bo_ref,
                   o_ref):
    """x_ref: (T, TB, F) time-major input tile.
    Weights are pre-padded to LANE columns (pad cols/rows are zero).
    o_ref: (TB, LANE) -- only columns [:OUTPUT_SIZE] are meaningful."""
    T, TB, _ = x_ref.shape

    wxh = wxh_ref[...]   # (F, LANE)      x -> hidden
    whh = whh_ref[...]   # (LANE, LANE)   hidden -> hidden
    bh = bh_ref[...]     # (1, LANE)
    wxo = wxo_ref[...]   # (F, LANE)      x -> output
    who = who_ref[...]   # (LANE, LANE)   hidden -> output
    bo = bo_ref[...]     # (1, LANE)

    h = jnp.zeros((TB, LANE), jnp.float32)
    out = jnp.zeros((TB, LANE), jnp.float32)

    # T is a small static trip count -> unroll so every x_ref index is static.
    for t in range(T):
        xt = x_ref[t]                              # (TB, F)
        valid = xt[:, 0:1] != -1.0                 # (TB, 1) step mask (-1 sentinel)

        # combined = cat(x, h); split the Linear into x-part + h-part.
        h_new = (jnp.dot(xt, wxh, preferred_element_type=jnp.float32)
                 + jnp.dot(h, whh, preferred_element_type=jnp.float32)
                 + bh)
        z = (jnp.dot(xt, wxo, preferred_element_type=jnp.float32)
             + jnp.dot(h, who, preferred_element_type=jnp.float32)
             + bo)
        o_new = 1.0 / (1.0 + jnp.exp(-z))          # sigmoid

        h = jnp.where(valid, h_new, h)
        out = jnp.where(valid, o_new, out)

    o_ref[...] = out.astype(o_ref.dtype)


def _round_up(x, m):
    return ((x + m - 1) // m) * m


def _pad_params(params):
    """Logical params (stored (in_features, out_features)) -> lane-padded ops."""
    w_i2h, b_i2h, w_i2o, b_i2o = params
    F, H, OUT = INPUT_SIZE, HIDDEN_SIZE, OUTPUT_SIZE

    wxh = jnp.zeros((F, LANE), jnp.float32).at[:, :H].set(w_i2h[:F])
    whh = jnp.zeros((LANE, LANE), jnp.float32).at[:H, :H].set(w_i2h[F:])
    bh = jnp.zeros((1, LANE), jnp.float32).at[0, :H].set(b_i2h)
    wxo = jnp.zeros((F, LANE), jnp.float32).at[:, :OUT].set(w_i2o[:F])
    who = jnp.zeros((LANE, LANE), jnp.float32).at[:H, :OUT].set(w_i2o[F:])
    bo = jnp.zeros((1, LANE), jnp.float32).at[0, :OUT].set(b_i2o)
    return wxh, whh, bh, wxo, who, bo


def rnn_ts_forward(line_tensors, params, batch_tile=None):
    """line_tensors: (B, T, INPUT_SIZE). Steps whose feature 0 == -1 are skipped.
    Returns shape (B * OUTPUT_SIZE,) like torch.cat(...).reshape([-1])."""
    wxh, whh, bh, wxo, who, bo = _pad_params(params)

    x = jnp.asarray(line_tensors, jnp.float32)
    B, T, F = x.shape
    assert F == INPUT_SIZE

    TB = batch_tile if batch_tile is not None else min(512, _round_up(B, 8))
    B_pad = _round_up(B, TB)

    xt = jnp.transpose(x, (1, 0, 2))  # (T, B, F) time-major
    if B_pad != B:
        # Pad rows are all-sentinel -> every step masked; sliced off below.
        pad = jnp.full((T, B_pad - B, F), -1.0, jnp.float32)
        xt = jnp.concatenate([xt, pad], axis=1)

    flops = int(2 * B * T * (F + HIDDEN_SIZE) * (HIDDEN_SIZE + OUTPUT_SIZE))
    bytes_accessed = int(4 * (x.size + 2 * LANE * LANE + 2 * F * LANE
                              + 2 * LANE + B_pad * LANE))

    out_padded = pl.pallas_call(
        _rnn_ts_kernel,
        out_shape=jax.ShapeDtypeStruct((B_pad, LANE), jnp.float32),
        grid=(B_pad // TB,),
        in_specs=[
            pl.BlockSpec((T, TB, F), lambda i: (0, i, 0)),   # per-tile input (pipelined)
            pl.BlockSpec((F, LANE), lambda i: (0, 0)),       # weights: VMEM-resident
            pl.BlockSpec((LANE, LANE), lambda i: (0, 0)),
            pl.BlockSpec((1, LANE), lambda i: (0, 0)),
            pl.BlockSpec((F, LANE), lambda i: (0, 0)),
            pl.BlockSpec((LANE, LANE), lambda i: (0, 0)),
            pl.BlockSpec((1, LANE), lambda i: (0, 0)),
        ],
        out_specs=pl.BlockSpec((TB, LANE), lambda i: (i, 0)),
        compiler_params=pltpu.CompilerParams(
            dimension_semantics=("parallel",)),
        cost_estimate=pl.CostEstimate(
            flops=flops,
            transcendentals=int(B * T * OUTPUT_SIZE),
            bytes_accessed=bytes_accessed),
    )(xt, wxh, whh, bh, wxo, who, bo)

    return out_padded[:B, :OUTPUT_SIZE].reshape(-1)


def init_params(key):
    """Mirror nn.Linear default init: U(-1/sqrt(fan_in), +1/sqrt(fan_in)).
    Weights stored as (in_features, out_features)."""
    F, H, OUT = INPUT_SIZE, HIDDEN_SIZE, OUTPUT_SIZE
    k = jax.random.split(key, 4)
    bound = 1.0 / (F + H) ** 0.5
    w_i2h = jax.random.uniform(k[0], (F + H, H), jnp.float32, -bound, bound)
    b_i2h = jax.random.uniform(k[1], (H,), jnp.float32, -bound, bound)
    w_i2o = jax.random.uniform(k[2], (F + H, OUT), jnp.float32, -bound, bound)
    b_i2o = jax.random.uniform(k[3], (OUT,), jnp.float32, -bound, bound)
    return w_i2h, b_i2h, w_i2o, b_i2o


def _reference(line_tensors, params):
    """Pure numpy re-implementation of RNN_TS.forward."""
    w_i2h, b_i2h, w_i2o, b_i2o = (np.asarray(p, np.float32) for p in params)
    x = np.asarray(line_tensors, np.float32)
    outs = []
    for seq in x:
        h = np.zeros((1, HIDDEN_SIZE), np.float32)
        out = np.zeros((1, OUTPUT_SIZE), np.float32)
        for t in range(seq.shape[0]):
            if seq[t, 0] != -1.0:
                combined = np.concatenate([seq[t][None, :], h], axis=1)
                h = combined @ w_i2h + b_i2h
                z = combined @ w_i2o + b_i2o
                out = 1.0 / (1.0 + np.exp(-z))
        # TODO(synk): a sequence with zero valid steps raises NameError in the
        # PyTorch module; here (and in the kernel) it yields 0.0 instead.
        outs.append(out)
    return np.concatenate(outs, axis=0).reshape(-1)


if __name__ == "__main__":
    key = jax.random.PRNGKey(0)
    kx, kp = jax.random.split(key)

    B, T = 2, 8
    x = jax.random.normal(kx, (B, T, INPUT_SIZE), jnp.float32)
    # Mark trailing steps of each sequence as padding via the module's -1
    # sentinel in feature 0 (these steps must not update hidden/output).
    x = x.at[0, 6:, 0].set(-1.0)
    x = x.at[1, 3:, 0].set(-1.0)

    params = init_params(kp)

    out = rnn_ts_forward(x, params)
    jax.block_until_ready(out)

    ref = _reference(x, params)
    assert out.shape == (B * OUTPUT_SIZE,)
    assert jnp.allclose(out, jnp.asarray(ref), atol=1e-4, rtol=1e-4)
    print("KERNEL_OK")
</pallas_src>

<mosaic_0001>
module attributes {stable_mosaic.version = 11 : i64} {
  func.func @_rnn_ts_kernel(%arg0: i32, %arg1: memref<8x8x5xf32, #tpu.memory_space<vmem>>, %arg2: memref<5x128xf32, #tpu.memory_space<vmem>>, %arg3: memref<128x128xf32, #tpu.memory_space<vmem>>, %arg4: memref<1x128xf32, #tpu.memory_space<vmem>>, %arg5: memref<5x128xf32, #tpu.memory_space<vmem>>, %arg6: memref<128x128xf32, #tpu.memory_space<vmem>>, %arg7: memref<1x128xf32, #tpu.memory_space<vmem>>, %arg8: memref<8x128xf32, #tpu.memory_space<vmem>>) attributes {dimension_semantics = [#tpu.dimension_semantics<parallel>], iteration_bounds = array<i64: 1>, scalar_prefetch = 0 : i64, scratch_operands = 0 : i64, tpu.core_type = #tpu.core_type<tc>, window_params = [{transform_indices = @transform_0, window_bounds = array<i64: 8, 8, 5>}, {pipeline_mode = #tpu.pipeline_mode<synchronous>, transform_indices = @transform_1, window_bounds = array<i64: 5, 128>}, {pipeline_mode = #tpu.pipeline_mode<synchronous>, transform_indices = @transform_2, window_bounds = array<i64: 128, 128>}, {pipeline_mode = #tpu.pipeline_mode<synchronous>, transform_indices = @transform_3, window_bounds = array<i64: 1, 128>}, {pipeline_mode = #tpu.pipeline_mode<synchronous>, transform_indices = @transform_4, window_bounds = array<i64: 5, 128>}, {pipeline_mode = #tpu.pipeline_mode<synchronous>, transform_indices = @transform_5, window_bounds = array<i64: 128, 128>}, {pipeline_mode = #tpu.pipeline_mode<synchronous>, transform_indices = @transform_6, window_bounds = array<i64: 1, 128>}, {transform_indices = @transform_7, window_bounds = array<i64: 8, 128>}]} {
    %c0 = arith.constant 0 : index
    %c0_0 = arith.constant 0 : index
    %0 = vector.load %arg2[%c0, %c0_0] : memref<5x128xf32, #tpu.memory_space<vmem>>, vector<5x128xf32>
    %c0_1 = arith.constant 0 : index
    %c0_2 = arith.constant 0 : index
    %1 = vector.load %arg3[%c0_1, %c0_2] : memref<128x128xf32, #tpu.memory_space<vmem>>, vector<128x128xf32>
    %c0_3 = arith.constant 0 : index
    %c0_4 = arith.constant 0 : index
    %2 = vector.load %arg4[%c0_3, %c0_4] : memref<1x128xf32, #tpu.memory_space<vmem>>, vector<1x128xf32>
    %c0_5 = arith.constant 0 : index
    %c0_6 = arith.constant 0 : index
    %3 = vector.load %arg5[%c0_5, %c0_6] : memref<5x128xf32, #tpu.memory_space<vmem>>, vector<5x128xf32>
    %c0_7 = arith.constant 0 : index
    %c0_8 = arith.constant 0 : index
    %4 = vector.load %arg6[%c0_7, %c0_8] : memref<128x128xf32, #tpu.memory_space<vmem>>, vector<128x128xf32>
    %c0_9 = arith.constant 0 : index
    %c0_10 = arith.constant 0 : index
    %5 = vector.load %arg7[%c0_9, %c0_10] : memref<1x128xf32, #tpu.memory_space<vmem>>, vector<1x128xf32>
    %cst = arith.constant 0.000000e+00 : f32
    %6 = vector.broadcast %cst : f32 to vector<8x128xf32>
    %cst_11 = arith.constant 0.000000e+00 : f32
    %7 = vector.broadcast %cst_11 : f32 to vector<8x128xf32>
    %c0_12 = arith.constant 0 : index
    %c0_13 = arith.constant 0 : index
    %c0_14 = arith.constant 0 : index
    %8 = vector.load %arg1[%c0_12, %c0_13, %c0_14] : memref<8x8x5xf32, #tpu.memory_space<vmem>>, vector<1x8x5xf32>
    %9 = vector.shape_cast %8 : vector<1x8x5xf32> to vector<8x5xf32>
    %10 = vector.extract_strided_slice %9 {offsets = [0, 0], sizes = [8, 1], strides = [1, 1]} : vector<8x5xf32> to vector<8x1xf32>
    %cst_15 = arith.constant -1.000000e+00 : f32
    %11 = vector.broadcast %cst_15 : f32 to vector<8x1xf32>
    %12 = arith.cmpf one, %10, %11 : vector<8x1xf32>
    %cst_16 = arith.constant dense<0.000000e+00> : vector<8x128xf32>
    %13 = tpu.matmul %9, %0, %cst_16 {dimension_numbers = #tpu.dot_dimension_numbers<[1], [0], [0], [1], [0, 0, 1, 1], [], []>} : vector<8x5xf32>, vector<5x128xf32>, vector<8x128xf32> -> vector<8x128xf32>
    %cst_17 = arith.constant dense<0.000000e+00> : vector<8x128xf32>
    %14 = tpu.matmul %6, %1, %cst_17 {dimension_numbers = #tpu.dot_dimension_numbers<[1], [0], [0], [1], [0, 0, 1, 1], [], []>} : vector<8x128xf32>, vector<128x128xf32>, vector<8x128xf32> -> vector<8x128xf32>
    %15 = arith.addf %13, %14 : vector<8x128xf32>
    %16 = vector.broadcast %2 : vector<1x128xf32> to vector<8x128xf32>
    %17 = arith.addf %15, %16 : vector<8x128xf32>
    %cst_18 = arith.constant dense<0.000000e+00> : vector<8x128xf32>
    %18 = tpu.matmul %9, %3, %cst_18 {dimension_numbers = #tpu.dot_dimension_numbers<[1], [0], [0], [1], [0, 0, 1, 1], [], []>} : vector<8x5xf32>, vector<5x128xf32>, vector<8x128xf32> -> vector<8x128xf32>
    %cst_19 = arith.constant dense<0.000000e+00> : vector<8x128xf32>
    %19 = tpu.matmul %6, %4, %cst_19 {dimension_numbers = #tpu.dot_dimension_numbers<[1], [0], [0], [1], [0, 0, 1, 1], [], []>} : vector<8x128xf32>, vector<128x128xf32>, vector<8x128xf32> -> vector<8x128xf32>
    %20 = arith.addf %18, %19 : vector<8x128xf32>
    %21 = vector.broadcast %5 : vector<1x128xf32> to vector<8x128xf32>
    %22 = arith.addf %20, %21 : vector<8x128xf32>
    %cst_20 = arith.constant 0.000000e+00 : f32
    %23 = vector.broadcast %cst_20 : f32 to vector<8x128xf32>
    %24 = arith.subf %23, %22 : vector<8x128xf32>
    %25 = math.exp %24 : vector<8x128xf32>
    %cst_21 = arith.constant 1.000000e+00 : f32
    %26 = vector.broadcast %cst_21 : f32 to vector<8x128xf32>
    %27 = arith.addf %26, %25 : vector<8x128xf32>
    %cst_22 = arith.constant 1.000000e+00 : f32
    %28 = vector.broadcast %cst_22 : f32 to vector<8x128xf32>
    %29 = arith.divf %28, %27 : vector<8x128xf32>
    %30 = vector.shape_cast %12 : vector<8x1xi1> to vector<8x1xi1>
    %31 = vector.broadcast %30 : vector<8x1xi1> to vector<8x128xi1>
    %32 = arith.select %31, %17, %6 : vector<8x128xi1>, vector<8x128xf32>
    %33 = vector.shape_cast %12 : vector<8x1xi1> to vector<8x1xi1>
    %34 = vector.broadcast %33 : vector<8x1xi1> to vector<8x128xi1>
    %35 = arith.select %34, %29, %7 : vector<8x128xi1>, vector<8x128xf32>
    %c1 = arith.constant 1 : index
    %c0_23 = arith.constant 0 : index
    %c0_24 = arith.constant 0 : index
    %36 = vector.load %arg1[%c1, %c0_23, %c0_24] : memref<8x8x5xf32, #tpu.memory_space<vmem>>, vector<1x8x5xf32>
    %37 = vector.shape_cast %36 : vector<1x8x5xf32> to vector<8x5xf32>
    %38 = vector.extract_strided_slice %37 {offsets = [0, 0], sizes = [8, 1], strides = [1, 1]} : vector<8x5xf32> to vector<8x1xf32>
    %cst_25 = arith.constant -1.000000e+00 : f32
    %39 = vector.broadcast %cst_25 : f32 to vector<8x1xf32>
    %40 = arith.cmpf one, %38, %39 : vector<8x1xf32>
    %cst_26 = arith.constant dense<0.000000e+00> : vector<8x128xf32>
    %41 = tpu.matmul %37, %0, %cst_26 {dimension_numbers = #tpu.dot_dimension_numbers<[1], [0], [0], [1], [0, 0, 1, 1], [], []>} : vector<8x5xf32>, vector<5x128xf32>, vector<8x128xf32> -> vector<8x128xf32>
    %cst_27 = arith.constant dense<0.000000e+00> : vector<8x128xf32>
    %42 = tpu.matmul %32, %1, %cst_27 {dimension_numbers = #tpu.dot_dimension_numbers<[1], [0], [0], [1], [0, 0, 1, 1], [], []>} : vector<8x128xf32>, vector<128x128xf32>, vector<8x128xf32> -> vector<8x128xf32>
    %43 = arith.addf %41, %42 : vector<8x128xf32>
    %44 = vector.broadcast %2 : vector<1x128xf32> to vector<8x128xf32>
    %45 = arith.addf %43, %44 : vector<8x128xf32>
    %cst_28 = arith.constant dense<0.000000e+00> : vector<8x128xf32>
    %46 = tpu.matmul %37, %3, %cst_28 {dimension_numbers = #tpu.dot_dimension_numbers<[1], [0], [0], [1], [0, 0, 1, 1], [], []>} : vector<8x5xf32>, vector<5x128xf32>, vector<8x128xf32> -> vector<8x128xf32>
    %cst_29 = arith.constant dense<0.000000e+00> : vector<8x128xf32>
    %47 = tpu.matmul %32, %4, %cst_29 {dimension_numbers = #tpu.dot_dimension_numbers<[1], [0], [0], [1], [0, 0, 1, 1], [], []>} : vector<8x128xf32>, vector<128x128xf32>, vector<8x128xf32> -> vector<8x128xf32>
    %48 = arith.addf %46, %47 : vector<8x128xf32>
    %49 = vector.broadcast %5 : vector<1x128xf32> to vector<8x128xf32>
    %50 = arith.addf %48, %49 : vector<8x128xf32>
    %cst_30 = arith.constant 0.000000e+00 : f32
    %51 = vector.broadcast %cst_30 : f32 to vector<8x128xf32>
    %52 = arith.subf %51, %50 : vector<8x128xf32>
    %53 = math.exp %52 : vector<8x128xf32>
    %cst_31 = arith.constant 1.000000e+00 : f32
    %54 = vector.broadcast %cst_31 : f32 to vector<8x128xf32>
    %55 = arith.addf %54, %53 : vector<8x128xf32>
    %cst_32 = arith.constant 1.000000e+00 : f32
    %56 = vector.broadcast %cst_32 : f32 to vector<8x128xf32>
    %57 = arith.divf %56, %55 : vector<8x128xf32>
    %58 = vector.shape_cast %40 : vector<8x1xi1> to vector<8x1xi1>
    %59 = vector.broadcast %58 : vector<8x1xi1> to vector<8x128xi1>
    %60 = arith.select %59, %45, %32 : vector<8x128xi1>, vector<8x128xf32>
    %61 = vector.shape_cast %40 : vector<8x1xi1> to vector<8x1xi1>
    %62 = vector.broadcast %61 : vector<8x1xi1> to vector<8x128xi1>
    %63 = arith.select %62, %57, %35 : vector<8x128xi1>, vector<8x128xf32>
    %c2 = arith.constant 2 : index
    %c0_33 = arith.constant 0 : index
    %c0_34 = arith.constant 0 : index
    %64 = vector.load %arg1[%c2, %c0_33, %c0_34] : memref<8x8x5xf32, #tpu.memory_space<vmem>>, vector<1x8x5xf32>
    %65 = vector.shape_cast %64 : vector<1x8x5xf32> to vector<8x5xf32>
    %66 = vector.extract_strided_slice %65 {offsets = [0, 0], sizes = [8, 1], strides = [1, 1]} : vector<8x5xf32> to vector<8x1xf32>
    %cst_35 = arith.constant -1.000000e+00 : f32
    %67 = vector.broadcast %cst_35 : f32 to vector<8x1xf32>
    %68 = arith.cmpf one, %66, %67 : vector<8x1xf32>
    %cst_36 = arith.constant dense<0.000000e+00> : vector<8x128xf32>
    %69 = tpu.matmul %65, %0, %cst_36 {dimension_numbers = #tpu.dot_dimension_numbers<[1], [0], [0], [1], [0, 0, 1, 1], [], []>} : vector<8x5xf32>, vector<5x128xf32>, vector<8x128xf32> -> vector<8x128xf32>
    %cst_37 = arith.constant dense<0.000000e+00> : vector<8x128xf32>
    %70 = tpu.matmul %60, %1, %cst_37 {dimension_numbers = #tpu.dot_dimension_numbers<[1], [0], [0], [1], [0, 0, 1, 1], [], []>} : vector<8x128xf32>, vector<128x128xf32>, vector<8x128xf32> -> vector<8x128xf32>
    %71 = arith.addf %69, %70 : vector<8x128xf32>
    %72 = vector.broadcast %2 : vector<1x128xf32> to vector<8x128xf32>
    %73 = arith.addf %71, %72 : vector<8x128xf32>
    %cst_38 = arith.constant dense<0.000000e+00> : vector<8x128xf32>
    %74 = tpu.matmul %65, %3, %cst_38 {dimension_numbers = #tpu.dot_dimension_numbers<[1], [0], [0], [1], [0, 0, 1, 1], [], []>} : vector<8x5xf32>, vector<5x128xf32>, vector<8x128xf32> -> vector<8x128xf32>
    %cst_39 = arith.constant dense<0.000000e+00> : vector<8x128xf32>
    %75 = tpu.matmul %60, %4, %cst_39 {dimension_numbers = #tpu.dot_dimension_numbers<[1], [0], [0], [1], [0, 0, 1, 1], [], []>} : vector<8x128xf32>, vector<128x128xf32>, vector<8x128xf32> -> vector<8x128xf32>
    %76 = arith.addf %74, %75 : vector<8x128xf32>
    %77 = vector.broadcast %5 : vector<1x128xf32> to vector<8x128xf32>
    %78 = arith.addf %76, %77 : vector<8x128xf32>
    %cst_40 = arith.constant 0.000000e+00 : f32
    %79 = vector.broadcast %cst_40 : f32 to vector<8x128xf32>
    %80 = arith.subf %79, %78 : vector<8x128xf32>
    %81 = math.exp %80 : vector<8x128xf32>
    %cst_41 = arith.constant 1.000000e+00 : f32
    %82 = vector.broadcast %cst_41 : f32 to vector<8x128xf32>
    %83 = arith.addf %82, %81 : vector<8x128xf32>
    %cst_42 = arith.constant 1.000000e+00 : f32
    %84 = vector.broadcast %cst_42 : f32 to vector<8x128xf32>
    %85 = arith.divf %84, %83 : vector<8x128xf32>
    %86 = vector.shape_cast %68 : vector<8x1xi1> to vector<8x1xi1>
    %87 = vector.broadcast %86 : vector<8x1xi1> to vector<8x128xi1>
    %88 = arith.select %87, %73, %60 : vector<8x128xi1>, vector<8x128xf32>
    %89 = vector.shape_cast %68 : vector<8x1xi1> to vector<8x1xi1>
    %90 = vector.broadcast %89 : vector<8x1xi1> to vector<8x128xi1>
    %91 = arith.select %90, %85, %63 : vector<8x128xi1>, vector<8x128xf32>
    %c3 = arith.constant 3 : index
    %c0_43 = arith.constant 0 : index
    %c0_44 = arith.constant 0 : index
    %92 = vector.load %arg1[%c3, %c0_43, %c0_44] : memref<8x8x5xf32, #tpu.memory_space<vmem>>, vector<1x8x5xf32>
    %93 = vector.shape_cast %92 : vector<1x8x5xf32> to vector<8x5xf32>
    %94 = vector.extract_strided_slice %93 {offsets = [0, 0], sizes = [8, 1], strides = [1, 1]} : vector<8x5xf32> to vector<8x1xf32>
    %cst_45 = arith.constant -1.000000e+00 : f32
    %95 = vector.broadcast %cst_45 : f32 to vector<8x1xf32>
    %96 = arith.cmpf one, %94, %95 : vector<8x1xf32>
    %cst_46 = arith.constant dense<0.000000e+00> : vector<8x128xf32>
    %97 = tpu.matmul %93, %0, %cst_46 {dimension_numbers = #tpu.dot_dimension_numbers<[1], [0], [0], [1], [0, 0, 1, 1], [], []>} : vector<8x5xf32>, vector<5x128xf32>, vector<8x128xf32> -> vector<8x128xf32>
    %cst_47 = arith.constant dense<0.000000e+00> : vector<8x128xf32>
    %98 = tpu.matmul %88, %1, %cst_47 {dimension_numbers = #tpu.dot_dimension_numbers<[1], [0], [0], [1], [0, 0, 1, 1], [], []>} : vector<8x128xf32>, vector<128x128xf32>, vector<8x128xf32> -> vector<8x128xf32>
    %99 = arith.addf %97, %98 : vector<8x128xf32>
    %100 = vector.broadcast %2 : vector<1x128xf32> to vector<8x128xf32>
    %101 = arith.addf %99, %100 : vector<8x128xf32>
    %cst_48 = arith.constant dense<0.000000e+00> : vector<8x128xf32>
    %102 = tpu.matmul %93, %3, %cst_48 {dimension_numbers = #tpu.dot_dimension_numbers<[1], [0], [0], [1], [0, 0, 1, 1], [], []>} : vector<8x5xf32>, vector<5x128xf32>, vector<8x128xf32> -> vector<8x128xf32>
    %cst_49 = arith.constant dense<0.000000e+00> : vector<8x128xf32>
    %103 = tpu.matmul %88, %4, %cst_49 {dimension_numbers = #tpu.dot_dimension_numbers<[1], [0], [0], [1], [0, 0, 1, 1], [], []>} : vector<8x128xf32>, vector<128x128xf32>, vector<8x128xf32> -> vector<8x128xf32>
    %104 = arith.addf %102, %103 : vector<8x128xf32>
    %105 = vector.broadcast %5 : vector<1x128xf32> to vector<8x128xf32>
    %106 = arith.addf %104, %105 : vector<8x128xf32>
    %cst_50 = arith.constant 0.000000e+00 : f32
    %107 = vector.broadcast %cst_50 : f32 to vector<8x128xf32>
    %108 = arith.subf %107, %106 : vector<8x128xf32>
    %109 = math.exp %108 : vector<8x128xf32>
    %cst_51 = arith.constant 1.000000e+00 : f32
    %110 = vector.broadcast %cst_51 : f32 to vector<8x128xf32>
    %111 = arith.addf %110, %109 : vector<8x128xf32>
    %cst_52 = arith.constant 1.000000e+00 : f32
    %112 = vector.broadcast %cst_52 : f32 to vector<8x128xf32>
    %113 = arith.divf %112, %111 : vector<8x128xf32>
    %114 = vector.shape_cast %96 : vector<8x1xi1> to vector<8x1xi1>
    %115 = vector.broadcast %114 : vector<8x1xi1> to vector<8x128xi1>
    %116 = arith.select %115, %101, %88 : vector<8x128xi1>, vector<8x128xf32>
    %117 = vector.shape_cast %96 : vector<8x1xi1> to vector<8x1xi1>
    %118 = vector.broadcast %117 : vector<8x1xi1> to vector<8x128xi1>
    %119 = arith.select %118, %113, %91 : vector<8x128xi1>, vector<8x128xf32>
    %c4 = arith.constant 4 : index
    %c0_53 = arith.constant 0 : index
    %c0_54 = arith.constant 0 : index
    %120 = vector.load %arg1[%c4, %c0_53, %c0_54] : memref<8x8x5xf32, #tpu.memory_space<vmem>>, vector<1x8x5xf32>
    %121 = vector.shape_cast %120 : vector<1x8x5xf32> to vector<8x5xf32>
    %122 = vector.extract_strided_slice %121 {offsets = [0, 0], sizes = [8, 1], strides = [1, 1]} : vector<8x5xf32> to vector<8x1xf32>
    %cst_55 = arith.constant -1.000000e+00 : f32
    %123 = vector.broadcast %cst_55 : f32 to vector<8x1xf32>
    %124 = arith.cmpf one, %122, %123 : vector<8x1xf32>
    %cst_56 = arith.constant dense<0.000000e+00> : vector<8x128xf32>
    %125 = tpu.matmul %121, %0, %cst_56 {dimension_numbers = #tpu.dot_dimension_numbers<[1], [0], [0], [1], [0, 0, 1, 1], [], []>} : vector<8x5xf32>, vector<5x128xf32>, vector<8x128xf32> -> vector<8x128xf32>
    %cst_57 = arith.constant dense<0.000000e+00> : vector<8x128xf32>
    %126 = tpu.matmul %116, %1, %cst_57 {dimension_numbers = #tpu.dot_dimension_numbers<[1], [0], [0], [1], [0, 0, 1, 1], [], []>} : vector<8x128xf32>, vector<128x128xf32>, vector<8x128xf32> -> vector<8x128xf32>
    %127 = arith.addf %125, %126 : vector<8x128xf32>
    %128 = vector.broadcast %2 : vector<1x128xf32> to vector<8x128xf32>
    %129 = arith.addf %127, %128 : vector<8x128xf32>
    %cst_58 = arith.constant dense<0.000000e+00> : vector<8x128xf32>
    %130 = tpu.matmul %121, %3, %cst_58 {dimension_numbers = #tpu.dot_dimension_numbers<[1], [0], [0], [1], [0, 0, 1, 1], [], []>} : vector<8x5xf32>, vector<5x128xf32>, vector<8x128xf32> -> vector<8x128xf32>
    %cst_59 = arith.constant dense<0.000000e+00> : vector<8x128xf32>
    %131 = tpu.matmul %116, %4, %cst_59 {dimension_numbers = #tpu.dot_dimension_numbers<[1], [0], [0], [1], [0, 0, 1, 1], [], []>} : vector<8x128xf32>, vector<128x128xf32>, vector<8x128xf32> -> vector<8x128xf32>
    %132 = arith.addf %130, %131 : vector<8x128xf32>
    %133 = vector.broadcast %5 : vector<1x128xf32> to vector<8x128xf32>
    %134 = arith.addf %132, %133 : vector<8x128xf32>
    %cst_60 = arith.constant 0.000000e+00 : f32
    %135 = vector.broadcast %cst_60 : f32 to vector<8x128xf32>
    %136 = arith.subf %135, %134 : vector<8x128xf32>
    %137 = math.exp %136 : vector<8x128xf32>
    %cst_61 = arith.constant 1.000000e+00 : f32
    %138 = vector.broadcast %cst_61 : f32 to vector<8x128xf32>
    %139 = arith.addf %138, %137 : vector<8x128xf32>
    %cst_62 = arith.constant 1.000000e+00 : f32
    %140 = vector.broadcast %cst_62 : f32 to vector<8x128xf32>
    %141 = arith.divf %140, %139 : vector<8x128xf32>
    %142 = vector.shape_cast %124 : vector<8x1xi1> to vector<8x1xi1>
    %143 = vector.broadcast %142 : vector<8x1xi1> to vector<8x128xi1>
    %144 = arith.select %143, %129, %116 : vector<8x128xi1>, vector<8x128xf32>
    %145 = vector.shape_cast %124 : vector<8x1xi1> to vector<8x1xi1>
    %146 = vector.broadcast %145 : vector<8x1xi1> to vector<8x128xi1>
    %147 = arith.select %146, %141, %119 : vector<8x128xi1>, vector<8x128xf32>
    %c5 = arith.constant 5 : index
    %c0_63 = arith.constant 0 : index
    %c0_64 = arith.constant 0 : index
    %148 = vector.load %arg1[%c5, %c0_63, %c0_64] : memref<8x8x5xf32, #tpu.memory_space<vmem>>, vector<1x8x5xf32>
    %149 = vector.shape_cast %148 : vector<1x8x5xf32> to vector<8x5xf32>
    %150 = vector.extract_strided_slice %149 {offsets = [0, 0], sizes = [8, 1], strides = [1, 1]} : vector<8x5xf32> to vector<8x1xf32>
    %cst_65 = arith.constant -1.000000e+00 : f32
    %151 = vector.broadcast %cst_65 : f32 to vector<8x1xf32>
    %152 = arith.cmpf one, %150, %151 : vector<8x1xf32>
    %cst_66 = arith.constant dense<0.000000e+00> : vector<8x128xf32>
    %153 = tpu.matmul %149, %0, %cst_66 {dimension_numbers = #tpu.dot_dimension_numbers<[1], [0], [0], [1], [0, 0, 1, 1], [], []>} : vector<8x5xf32>, vector<5x128xf32>, vector<8x128xf32> -> vector<8x128xf32>
    %cst_67 = arith.constant dense<0.000000e+00> : vector<8x128xf32>
    %154 = tpu.matmul %144, %1, %cst_67 {dimension_numbers = #tpu.dot_dimension_numbers<[1], [0], [0], [1], [0, 0, 1, 1], [], []>} : vector<8x128xf32>, vector<128x128xf32>, vector<8x128xf32> -> vector<8x128xf32>
    %155 = arith.addf %153, %154 : vector<8x128xf32>
    %156 = vector.broadcast %2 : vector<1x128xf32> to vector<8x128xf32>
    %157 = arith.addf %155, %156 : vector<8x128xf32>
    %cst_68 = arith.constant dense<0.000000e+00> : vector<8x128xf32>
    %158 = tpu.matmul %149, %3, %cst_68 {dimension_numbers = #tpu.dot_dimension_numbers<[1], [0], [0], [1], [0, 0, 1, 1], [], []>} : vector<8x5xf32>, vector<5x128xf32>, vector<8x128xf32> -> vector<8x128xf32>
    %cst_69 = arith.constant dense<0.000000e+00> : vector<8x128xf32>
    %159 = tpu.matmul %144, %4, %cst_69 {dimension_numbers = #tpu.dot_dimension_numbers<[1], [0], [0], [1], [0, 0, 1, 1], [], []>} : vector<8x128xf32>, vector<128x128xf32>, vector<8x128xf32> -> vector<8x128xf32>
    %160 = arith.addf %158, %159 : vector<8x128xf32>
    %161 = vector.broadcast %5 : vector<1x128xf32> to vector<8x128xf32>
    %162 = arith.addf %160, %161 : vector<8x128xf32>
    %cst_70 = arith.constant 0.000000e+00 : f32
    %163 = vector.broadcast %cst_70 : f32 to vector<8x128xf32>
    %164 = arith.subf %163, %162 : vector<8x128xf32>
    %165 = math.exp %164 : vector<8x128xf32>
    %cst_71 = arith.constant 1.000000e+00 : f32
    %166 = vector.broadcast %cst_71 : f32 to vector<8x128xf32>
    %167 = arith.addf %166, %165 : vector<8x128xf32>
    %cst_72 = arith.constant 1.000000e+00 : f32
    %168 = vector.broadcast %cst_72 : f32 to vector<8x128xf32>
    %169 = arith.divf %168, %167 : vector<8x128xf32>
    %170 = vector.shape_cast %152 : vector<8x1xi1> to vector<8x1xi1>
    %171 = vector.broadcast %170 : vector<8x1xi1> to vector<8x128xi1>
    %172 = arith.select %171, %157, %144 : vector<8x128xi1>, vector<8x128xf32>
    %173 = vector.shape_cast %152 : vector<8x1xi1> to vector<8x1xi1>
    %174 = vector.broadcast %173 : vector<8x1xi1> to vector<8x128xi1>
    %175 = arith.select %174, %169, %147 : vector<8x128xi1>, vector<8x128xf32>
    %c6 = arith.constant 6 : index
    %c0_73 = arith.constant 0 : index
    %c0_74 = arith.constant 0 : index
    %176 = vector.load %arg1[%c6, %c0_73, %c0_74] : memref<8x8x5xf32, #tpu.memory_space<vmem>>, vector<1x8x5xf32>
    %177 = vector.shape_cast %176 : vector<1x8x5xf32> to vector<8x5xf32>
    %178 = vector.extract_strided_slice %177 {offsets = [0, 0], sizes = [8, 1], strides = [1, 1]} : vector<8x5xf32> to vector<8x1xf32>
    %cst_75 = arith.constant -1.000000e+00 : f32
    %179 = vector.broadcast %cst_75 : f32 to vector<8x1xf32>
    %180 = arith.cmpf one, %178, %179 : vector<8x1xf32>
    %cst_76 = arith.constant dense<0.000000e+00> : vector<8x128xf32>
    %181 = tpu.matmul %177, %0, %cst_76 {dimension_numbers = #tpu.dot_dimension_numbers<[1], [0], [0], [1], [0, 0, 1, 1], [], []>} : vector<8x5xf32>, vector<5x128xf32>, vector<8x128xf32> -> vector<8x128xf32>
    %cst_77 = arith.constant dense<0.000000e+00> : vector<8x128xf32>
    %182 = tpu.matmul %172, %1, %cst_77 {dimension_numbers = #tpu.dot_dimension_numbers<[1], [0], [0], [1], [0, 0, 1, 1], [], []>} : vector<8x128xf32>, vector<128x128xf32>, vector<8x128xf32> -> vector<8x128xf32>
    %183 = arith.addf %181, %182 : vector<8x128xf32>
    %184 = vector.broadcast %2 : vector<1x128xf32> to vector<8x128xf32>
    %185 = arith.addf %183, %184 : vector<8x128xf32>
    %cst_78 = arith.constant dense<0.000000e+00> : vector<8x128xf32>
    %186 = tpu.matmul %177, %3, %cst_78 {dimension_numbers = #tpu.dot_dimension_numbers<[1], [0], [0], [1], [0, 0, 1, 1], [], []>} : vector<8x5xf32>, vector<5x128xf32>, vector<8x128xf32> -> vector<8x128xf32>
    %cst_79 = arith.constant dense<0.000000e+00> : vector<8x128xf32>
    %187 = tpu.matmul %172, %4, %cst_79 {dimension_numbers = #tpu.dot_dimension_numbers<[1], [0], [0], [1], [0, 0, 1, 1], [], []>} : vector<8x128xf32>, vector<128x128xf32>, vector<8x128xf32> -> vector<8x128xf32>
    %188 = arith.addf %186, %187 : vector<8x128xf32>
    %189 = vector.broadcast %5 : vector<1x128xf32> to vector<8x128xf32>
    %190 = arith.addf %188, %189 : vector<8x128xf32>
    %cst_80 = arith.constant 0.000000e+00 : f32
    %191 = vector.broadcast %cst_80 : f32 to vector<8x128xf32>
    %192 = arith.subf %191, %190 : vector<8x128xf32>
    %193 = math.exp %192 : vector<8x128xf32>
    %cst_81 = arith.constant 1.000000e+00 : f32
    %194 = vector.broadcast %cst_81 : f32 to vector<8x128xf32>
    %195 = arith.addf %194, %193 : vector<8x128xf32>
    %cst_82 = arith.constant 1.000000e+00 : f32
    %196 = vector.broadcast %cst_82 : f32 to vector<8x128xf32>
    %197 = arith.divf %196, %195 : vector<8x128xf32>
    %198 = vector.shape_cast %180 : vector<8x1xi1> to vector<8x1xi1>
    %199 = vector.broadcast %198 : vector<8x1xi1> to vector<8x128xi1>
    %200 = arith.select %199, %185, %172 : vector<8x128xi1>, vector<8x128xf32>
    %201 = vector.shape_cast %180 : vector<8x1xi1> to vector<8x1xi1>
    %202 = vector.broadcast %201 : vector<8x1xi1> to vector<8x128xi1>
    %203 = arith.select %202, %197, %175 : vector<8x128xi1>, vector<8x128xf32>
    %c7 = arith.constant 7 : index
    %c0_83 = arith.constant 0 : index
    %c0_84 = arith.constant 0 : index
    %204 = vector.load %arg1[%c7, %c0_83, %c0_84] : memref<8x8x5xf32, #tpu.memory_space<vmem>>, vector<1x8x5xf32>
    %205 = vector.shape_cast %204 : vector<1x8x5xf32> to vector<8x5xf32>
    %206 = vector.extract_strided_slice %205 {offsets = [0, 0], sizes = [8, 1], strides = [1, 1]} : vector<8x5xf32> to vector<8x1xf32>
    %cst_85 = arith.constant -1.000000e+00 : f32
    %207 = vector.broadcast %cst_85 : f32 to vector<8x1xf32>
    %208 = arith.cmpf one, %206, %207 : vector<8x1xf32>
    %cst_86 = arith.constant dense<0.000000e+00> : vector<8x128xf32>
    %209 = tpu.matmul %205, %3, %cst_86 {dimension_numbers = #tpu.dot_dimension_numbers<[1], [0], [0], [1], [0, 0, 1, 1], [], []>} : vector<8x5xf32>, vector<5x128xf32>, vector<8x128xf32> -> vector<8x128xf32>
    %cst_87 = arith.constant dense<0.000000e+00> : vector<8x128xf32>
    %210 = tpu.matmul %200, %4, %cst_87 {dimension_numbers = #tpu.dot_dimension_numbers<[1], [0], [0], [1], [0, 0, 1, 1], [], []>} : vector<8x128xf32>, vector<128x128xf32>, vector<8x128xf32> -> vector<8x128xf32>
    %211 = arith.addf %209, %210 : vector<8x128xf32>
    %212 = vector.broadcast %5 : vector<1x128xf32> to vector<8x128xf32>
    %213 = arith.addf %211, %212 : vector<8x128xf32>
    %cst_88 = arith.constant 0.000000e+00 : f32
    %214 = vector.broadcast %cst_88 : f32 to vector<8x128xf32>
    %215 = arith.subf %214, %213 : vector<8x128xf32>
    %216 = math.exp %215 : vector<8x128xf32>
    %cst_89 = arith.constant 1.000000e+00 : f32
    %217 = vector.broadcast %cst_89 : f32 to vector<8x128xf32>
    %218 = arith.addf %217, %216 : vector<8x128xf32>
    %cst_90 = arith.constant 1.000000e+00 : f32
    %219 = vector.broadcast %cst_90 : f32 to vector<8x128xf32>
    %220 = arith.divf %219, %218 : vector<8x128xf32>
    %221 = vector.shape_cast %208 : vector<8x1xi1> to vector<8x1xi1>
    %222 = vector.broadcast %221 : vector<8x1xi1> to vector<8x128xi1>
    %223 = arith.select %222, %220, %203 : vector<8x128xi1>, vector<8x128xf32>
    %c0_91 = arith.constant 0 : index
    %c0_92 = arith.constant 0 : index
    %224 = vector.load %arg8[%c0_91, %c0_92] : memref<8x128xf32, #tpu.memory_space<vmem>>, vector<8x128xf32>
    tpu.vector_store %arg8[%c0_91, %c0_92], %223 {strides = array<i32>} : memref<8x128xf32, #tpu.memory_space<vmem>>, vector<8x128xf32>,
    return
  }
  func.func @transform_0(%arg0: i32) -> (i32, i32, i32) {
    %c0_i32 = arith.constant 0 : i32
    %c0_i32_0 = arith.constant 0 : i32
    %c0_i32_1 = arith.constant 0 : i32
    return %c0_i32, %arg0, %c0_i32_0 : i32, i32, i32
  }
  func.func @transform_1(%arg0: i32) -> (i32, i32) {
    %c0_i32 = arith.constant 0 : i32
    %c0_i32_0 = arith.constant 0 : i32
    %c0_i32_1 = arith.constant 0 : i32
    return %c0_i32, %c0_i32_0 : i32, i32
  }
  func.func @transform_2(%arg0: i32) -> (i32, i32) {
    %c0_i32 = arith.constant 0 : i32
    %c0_i32_0 = arith.constant 0 : i32
    %c0_i32_1 = arith.constant 0 : i32
    return %c0_i32, %c0_i32_0 : i32, i32
  }
  func.func @transform_3(%arg0: i32) -> (i32, i32) {
    %c0_i32 = arith.constant 0 : i32
    %c0_i32_0 = arith.constant 0 : i32
    %c0_i32_1 = arith.constant 0 : i32
    return %c0_i32, %c0_i32_0 : i32, i32
  }
  func.func @transform_4(%arg0: i32) -> (i32, i32) {
    %c0_i32 = arith.constant 0 : i32
    %c0_i32_0 = arith.constant 0 : i32
    %c0_i32_1 = arith.constant 0 : i32
    return %c0_i32, %c0_i32_0 : i32, i32
  }
  func.func @transform_5(%arg0: i32) -> (i32, i32) {
    %c0_i32 = arith.constant 0 : i32
    %c0_i32_0 = arith.constant 0 : i32
    %c0_i32_1 = arith.constant 0 : i32
    return %c0_i32, %c0_i32_0 : i32, i32
  }
  func.func @transform_6(%arg0: i32) -> (i32, i32) {
    %c0_i32 = arith.constant 0 : i32
    %c0_i32_0 = arith.constant 0 : i32
    %c0_i32_1 = arith.constant 0 : i32
    return %c0_i32, %c0_i32_0 : i32, i32
  }
  func.func @transform_7(%arg0: i32) -> (i32, i32) {
    %c0_i32 = arith.constant 0 : i32
    %c0_i32_0 = arith.constant 0 : i32
    return %arg0, %c0_i32 : i32, i32
  }
}

</mosaic_0001>

<bundles_post_ra>
// kernel: tpu_custom_call.1
= control target key start
LH: loop header
LB: loop body
LE: loop exit
PB: predicated region body
PF: predicated region fallthrough
CT: control target
= control target key end

     0   :  { %12 = vsyncpa [#allocation3], 0  ;;  %s4447_s0 = inlined_call_operand.vmem [shape: f32[8,8,5], index: 0, kind: input, shape index: {}]   ;;  %s4448_s1 = inlined_call_operand.vmem [shape: f32[5,128], index: 1, kind: input, shape index: {}]   ;;  %s4449_s2 = inlined_call_operand.hbm [shape: f32[128,128], index: 2, kind: input, shape index: {}]   ;;  %s4450_s3 = inlined_call_operand.vmem [shape: f32[1,128], index: 3, kind: input, shape index: {}]   ;;  %s4451_s4 = inlined_call_operand.vmem [shape: f32[5,128], index: 4, kind: input, shape index: {}]   ;;  %s4452_s5 = inlined_call_operand.hbm [shape: f32[128,128], index: 5, kind: input, shape index: {}]   ;;  %s4453_s6 = inlined_call_operand.vmem [shape: f32[1,128], index: 6, kind: input, shape index: {}]   ;;  %s4454_s7 = inlined_call_operand.hbm [shape: f32[8,128], index: 7, kind: output, shape index: {}]  }
   0x1   :  { %13 = vsyncpa [#allocation6], 0 }
   0x2   :  { %14 = vsyncpa [#allocation4], 0  ;;  %s3794_s24 = smov [#allocation2]   ;;  %s3722_s28 = scalar_lea.hbm %s4449_s2, 2048 }
   0x3   :  { %s24_s25 = sshll.u32 %s3794_s24, 4  ;;  %p3723_p0 = scmp.ne.s32.totalorder %s4449_s2, %s3722_s28  ;;  %s25_s25 = int_to_ptr.vmem [resolvable:$true] %s24_s25 }
   0x4   :  { %p3726_p1 = scmp.lt.u32.totalorder %s3722_s28, %s4449_s2 }
   0x6   :  { %p3728_p2 = pnand %p3726_p1, %p3723_p0 }
   0x8   :  { %3731 = shalt.err (!%p3728_p2)
}
   0x9   :  { %s3732_s10 = scalar_lea.vmem %s25_s25, 2048  ;;  %p3737_p4 = scmp.lt.s32.totalorder %s25_s25, %s25_s25 }
   0xa   :  { %p3733_p3 = scmp.ne.s32.totalorder %s25_s25, %s3732_s10  ;;  %p3738_p5 = scmp.lt.s32.totalorder %s3732_s10, %s3732_s10 }
   0xc   :  { %p3739_p6 = por %p3738_p5, %p3737_p4 }
   0xe   :  { %p3740_p7 = pnand %p3739_p6, %p3733_p3 }
  0x10   :  { %3743 = shalt.err (!%p3740_p7)
}
  0x11   :  { %s3795_s11 = smov 128   ;;  %s3796_s12 = smov 8  }
  0x12   :  { %30 = dma.hbm_to_vmem [thread:$0]  %s4449_s2, 2048, %s25_s25, [#allocation3], %s3795_s11, %s3795_s11, %s3796_s12  }
  0x13   :  { %s3797_s15 = smov [#allocation5]   ;;  %s3744_s19 = scalar_lea.hbm %s4452_s5, 2048 }
  0x14   :  { %s40_s16 = sshll.u32 %s3797_s15, 4  ;;  %p3745_p8 = scmp.ne.s32.totalorder %s4452_s5, %s3744_s19  ;;  %s41_s16 = int_to_ptr.vmem [resolvable:$true] %s40_s16 }
  0x15   :  { %p3748_p9 = scmp.lt.u32.totalorder %s3744_s19, %s4452_s5 }
  0x17   :  { %p3750_p10 = pnand %p3748_p9, %p3745_p8 }
  0x19   :  { %3753 = shalt.err (!%p3750_p10)
}
  0x1a   :  { %s3754_s24 = scalar_lea.vmem %s41_s16, 2048  ;;  %p3759_p12 = scmp.lt.s32.totalorder %s41_s16, %s41_s16 }
  0x1b   :  { %p3755_p11 = scmp.ne.s32.totalorder %s41_s16, %s3754_s24  ;;  %p3760_p13 = scmp.lt.s32.totalorder %s3754_s24, %s3754_s24 }
  0x1d   :  { %p3761_p0 = por %p3760_p13, %p3759_p12 }
  0x1f   :  { %p3762_p1 = pnand %p3761_p0, %p3755_p11 }
  0x21   :  { %3765 = shalt.err (!%p3762_p1)
}
  0x22   :  { %46 = dma.hbm_to_vmem [thread:$0]  %s4452_s5, 2048, %s41_s16, [#allocation6], %s3795_s11, %s3795_s11, %s3796_s12  }
  0x23   :  { %3788 = dma.done.wait [#allocation3], 2048  }
  0x24   :  { %3789 = vsyncadd [#allocation3], 4294965248 }
  0x25   :  { %3790 = dma.done.wait [#allocation6], 2048  }
  0x26   :  { %3791 = vsyncadd [#allocation6], 4294965248  ;;  %v3798_v0 = vmov 0.0|0.0   ;;  %v3799_v1 = vmov 0.0   ;;  %vm3800_vm0 = vmmov 0   ;;  %v3801_v2 = vmov 0  }
  0x27   :  { %3319 = vmatprep.subr.bf16.mxu0 %v3798_v0  ;;  %2754 = vmatprep.subr.mxu1 %v3799_v1  ;;  %vm167_vm1 = vcmask 1044480   ;;  %vm163_vm2 = vcmask 39936   ;;  %v56_v3 = vld [vmem:[#allocation2] sm:$0xff]  ;;  %v57_v4 = vld [vmem:[#allocation2 + $0x8] sm:$0xff]  ;;  %v58_v7 = vld [vmem:[#allocation2 + $0x10] sm:$0xff] }
  0x28   :  { %2756 = vmatprep.mubr.msk.f32.mxu1 %vm3800_vm0, %v3799_v1  ;;  %2751 = vmatprep.mubr.msk.f32.mxu0 %vm3800_vm0, %v3799_v1  ;;  %v3878_v5 = vld [vmem:[%s4448_s1] sm:$0x1f]  ;;  %v3880_v6 = vpack.c.bf16 %v57_v4, %v56_v3  ;;  %v59_v8 = vld [vmem:[#allocation2 + $0x18] sm:$0xff]  ;;  %v75_v11 = vld [vmem:[#allocation5 + $0x8] sm:$0xff] }
  0x29   :  { %3688 = vset.pattern.permute.xlu0 %v3801_v2  ;;  %3689 = vset.pattern.permute.xlu1 %v3801_v2  ;;  %v3887_v9 = vld [vmem:[%s4447_s0] sm:$0xff]  ;;  %v3894_v12 = vpack.c.bf16 %v59_v8, %v58_v7  ;;  %v76_v14 = vld [vmem:[#allocation5 + $0x10] sm:$0xff]  ;;  %v77_v15 = vld [vmem:[#allocation5 + $0x18] sm:$0xff] }
  0x2a   :  { %2755 = vmatpush3.msk.msra.mxu1 %vm167_vm1, %v3878_v5  ;;  %v74_v10 = vld [vmem:[#allocation5] sm:$0xff]  ;;  %vm92_vm3 = vcmp.ne.f32.partialorder %v3887_v9, -1.0  ;;  %3321 = vmatpush3.bf16.msra.mxu0 %v3880_v6  ;;  %v61_v18 = vld [vmem:[#allocation2 + $0x28] sm:$0xff]  ;;  %v3903_v19 = vpack.c.bf16 %v77_v15, %v76_v14  ;;  %v62_v23 = vld [vmem:[#allocation2 + $0x30] sm:$0xff] }
  0x2b   :  { %3343 = vmatprep.subr.bf16.mxu1 %v3798_v0  ;;  %2757 = vmatmul.mubr.msk.f32.vlgmr.msra.gmra.mrb[0].mxu1 %vm163_vm2, %v3887_v9  ;;  %v3896_v13 = vpack.c.bf16 %v75_v11, %v74_v10  ;;  %v404_v16 = vsel %vm92_vm3, 1, %v3801_v2  ;;  %v60_v17 = vld [vmem:[#allocation2 + $0x20] sm:$0xff]  ;;  %v79_v21 = vld [vmem:[#allocation5 + $0x28] sm:$0xff]  ;;  %v63_v24 = vld [vmem:[#allocation2 + $0x38] sm:$0xff] }
  0x2c   :  { %2791 = vmatprep.mubr.msk.f32.mxu1 %vm3800_vm0, %v3799_v1  ;;  %3322 = vmatprep.subr.bf16.mxu0 %v3798_v0  ;;  %v78_v20 = vld [vmem:[#allocation5 + $0x20] sm:$0xff]  ;;  %v3907_v22 = vpack.c.bf16 %v61_v18, %v60_v17  ;;  %v80_v26 = vld [vmem:[#allocation5 + $0x30] sm:$0xff]  ;;  %v81_v27 = vld [vmem:[#allocation5 + $0x38] sm:$0xff]  ;;  %v3915_v28 = vpack.c.bf16 %v63_v24, %v62_v23 }
  0x2d   :  { %406 = vperm.xlu0 %3688, %v404_v16   ;;  %3345 = vmatpush3.bf16.msra.mxu1 %v3896_v13  ;;  %v3911_v25 = vpack.c.bf16 %v79_v21, %v78_v20  ;;  %v3920_v29 = vld [vmem:[%s4447_s0 + $0x8] sm:$0xff]  ;;  %v64_v30 = vld [vmem:[#allocation2 + $0x40] sm:$0xff]  ;;  %v3930_v33 = vpack.c.bf16 %v81_v27, %v80_v26  ;;  %v3937_v35 = vld [vmem:[%s4447_s0 + $0x30] sm:$0xff] }
  0x2e   :  { %3346 = vmatprep.subr.bf16.mxu1 %v3798_v0  ;;  %3324 = vmatpush3.bf16.msra.mxu0 %v3894_v12  ;;  %v65_v31 = vld [vmem:[#allocation2 + $0x48] sm:$0xff]  ;;  %vm413_vm4 = vcmp.ne.f32.partialorder %v3920_v29, -1.0  ;;  %v3927_v32 = vld [vmem:[%s4447_s0 + $0x20] sm:$0xff]  ;;  %v66_v40 = vld [vmem:[#allocation2 + $0x50] sm:$0xff]  ;;  %vm1918_vm6 = vcmp.ne.f32.partialorder %v3937_v35, -1.0 }
  0x2f   :  { %3325 = vmatprep.subr.bf16.mxu0 %v3798_v0  ;;  %v705_v34 = vsel %vm413_vm4, 1, %v3801_v2  ;;  %vm1316_vm5 = vcmp.ne.f32.partialorder %v3927_v32, -1.0  ;;  %v82_v36 = vld [vmem:[#allocation5 + $0x40] sm:$0xff]  ;;  %v83_v37 = vld [vmem:[#allocation5 + $0x48] sm:$0xff]  ;;  %v3941_v38 = vpack.c.bf16 %v65_v31, %v64_v30  ;;  %v67_v41 = vld [vmem:[#allocation2 + $0x58] sm:$0xff]  ;;  %v2210_v46 = vsel %vm1918_vm6, 1, %v3801_v2 }
  0x30   :  { %v1608_v39 = vsel %vm1316_vm5, 1, %v3801_v2  ;;  %v3947_v42 = vpack.c.bf16 %v83_v37, %v82_v36  ;;  %v84_v43 = vld [vmem:[#allocation5 + $0x50] sm:$0xff]  ;;  %v85_v44 = vld [vmem:[#allocation5 + $0x58] sm:$0xff]  ;;  %v3951_v45 = vpack.c.bf16 %v67_v41, %v66_v40  ;;  %v68_v47 = vld [vmem:[#allocation2 + $0x60] sm:$0xff] }
  0x31   :  { %3348 = vmatpush3.bf16.msra.mxu1 %v3903_v19  ;;  %707 = vperm.xlu0 %3688, %v705_v34   ;;  %v69_v48 = vld [vmem:[#allocation2 + $0x68] sm:$0xff]  ;;  %v3956_v49 = vpack.c.bf16 %v85_v44, %v84_v43  ;;  %v86_v50 = vld [vmem:[#allocation5 + $0x60] sm:$0xff]  ;;  %v70_v53 = vld [vmem:[#allocation2 + $0x70] sm:$0xff] }
  0x32   :  { %3349 = vmatprep.subr.bf16.mxu1 %v3798_v0  ;;  %3327 = vmatpush3.bf16.msra.mxu0 %v3907_v22  ;;  %v87_v51 = vld [vmem:[#allocation5 + $0x68] sm:$0xff]  ;;  %v3960_v52 = vpack.c.bf16 %v69_v48, %v68_v47  ;;  %v71_v54 = vld [vmem:[#allocation2 + $0x78] sm:$0xff]  ;;  %v88_v56 = vld [vmem:[#allocation5 + $0x70] sm:$0xff] }
  0x33   :  { %3328 = vmatprep.subr.bf16.mxu0 %v3798_v0  ;;  %v3964_v55 = vpack.c.bf16 %v87_v51, %v86_v50  ;;  %v89_v57 = vld [vmem:[#allocation5 + $0x78] sm:$0xff]  ;;  %v3968_v58 = vpack.c.bf16 %v71_v54, %v70_v53  ;;  %v3980_v60 = vld [vmem:[%s4451_s4] sm:$0x1f]  ;;  %v4079_v26 = vld [vmem:[%s4447_s0 + $0x10] sm:$0xff] }
  0x34   :  { %v3972_v59 = vpack.c.bf16 %v89_v57, %v88_v56  ;;  %v4039_v63 = vld [vmem:[%s4450_s3] ss:$0 sm:$0xff]  ;;  %vm714_vm8 = vcmp.ne.f32.partialorder %v4079_v26, -1.0  ;;  %v4124_v36 = vld [vmem:[%s4447_s0 + $0x18] sm:$0xff] }
  0x35   :  { %3351 = vmatpush3.bf16.msra.mxu1 %v3911_v25  ;;  %1610 = vperm.xlu0 %3688, %v1608_v39   ;;  %v4048_v14 = vld [vmem:[%s4453_s6] ss:$0 sm:$0xff]  ;;  %v1006_v37 = vsel %vm714_vm8, 1, %v3801_v2  ;;  %vm1015_vm9 = vcmp.ne.f32.partialorder %v4124_v36, -1.0  ;;  %v4131_v39 = vld [vmem:[%s4447_s0 + $0x28] sm:$0xff]  ;;  %v4138_v41 = vld [vmem:[%s4447_s0 + $0x38] sm:$0xff] }
  0x36   :  { %3352 = vmatprep.subr.bf16.mxu1 %v3798_v0  ;;  %3330 = vmatpush3.bf16.msra.mxu0 %v3915_v28  ;;  %v1307_v40 = vsel %vm1015_vm9, 1, %v3801_v2  ;;  %vm1617_vm10 = vcmp.ne.f32.partialorder %v4131_v39, -1.0  ;;  %vm2219_vm11 = vcmp.ne.f32.partialorder %v4138_v41, -1.0  ;;  %s3802_s0 = smov [#allocation7]  }
  0x37   :  { %3331 = vmatprep.subr.bf16.mxu0 %v3798_v0  ;;  %1008 = vperm.xlu1 %3689, %v1006_v37   ;;  %v1909_v43 = vsel %vm1617_vm10, 1, %v3801_v2  ;;  %v2370_v44 = vsel %vm2219_vm11, 1, %v3801_v2  ;;  %s2383_s22 = sshll.u32 %s3802_s0, 4  ;;  %s2384_s22 = int_to_ptr.vmem [resolvable:$true] %s2383_s22 }
  0x38   :  { %s3766_s23 = scalar_lea.vmem %s2384_s22, 128  ;;  %p3771_p3 = scmp.lt.s32.totalorder %s2384_s22, %s2384_s22 }
  0x39   :  { %3354 = vmatpush3.bf16.msra.mxu1 %v3930_v33  ;;  %2212 = vperm.xlu0 %3688, %v2210_v46   ;;  %p3767_p2 = scmp.ne.s32.totalorder %s2384_s22, %s3766_s23  ;;  %p3772_p4 = scmp.lt.s32.totalorder %s3766_s23, %s3766_s23 }
  0x3a   :  { %3355 = vmatprep.subr.bf16.mxu1 %v3798_v0  ;;  %3333 = vmatpush3.bf16.msra.mxu0 %v3941_v38 }
  0x3b   :  { %3334 = vmatprep.subr.bf16.mxu0 %v3798_v0  ;;  %1309 = vperm.xlu1 %3689, %v1307_v40   ;;  %p3773_p5 = por %p3772_p4, %p3771_p3 }
  0x3d   :  { %3357 = vmatpush3.bf16.msra.mxu1 %v3947_v42  ;;  %p3774_p6 = pnand %p3773_p5, %p3767_p2 }
  0x3e   :  { %3358 = vmatprep.subr.bf16.mxu1 %v3798_v0  ;;  %3336 = vmatpush3.bf16.msra.mxu0 %v3951_v45 }
  0x3f   :  { %3337 = vmatprep.subr.bf16.mxu0 %v3798_v0  ;;  %1911 = vperm.xlu1 %3689, %v1909_v43  }
  0x41   :  { %3360 = vmatpush3.bf16.msra.mxu1 %v3956_v49 }
  0x42   :  { %3361 = vmatprep.subr.bf16.mxu1 %v3798_v0  ;;  %3339 = vmatpush3.bf16.msra.mxu0 %v3960_v52 }
  0x43   :  { %3340 = vmatprep.subr.bf16.mxu0 %v3798_v0  ;;  %2372 = vperm.xlu1 %3689, %v2370_v44  }
  0x45   :  { %3363 = vmatpush3.bf16.msra.mxu1 %v3964_v55 }
  0x46   :  { %3364 = vmatprep.subr.bf16.mxu1 %v3798_v0  ;;  %3342 = vmatpush3.bf16.msra.mxu0 %v3968_v58 }
  0x47   :  { %2794 = vmatprep.subr.mxu0 %v3799_v1 }
  0x49   :  { %3366 = vmatpush3.bf16.msra.mxu1 %v3972_v59  ;;  %2752 = vmatmul.mubr.f32.vlgmr.msra.gmra.mrb[0].mxu0 %v3799_v1 }
  0x4a   :  { %3367 = vmatprep.subr.bf16.mxu1 %v3798_v0  ;;  %2795 = vmatpush3.msk.msra.mxu0 %vm167_vm1, %v3980_v60 }
  0x4b   :  { %2796 = vmatprep.mubr.msk.f32.mxu0 %vm3800_vm0, %v3799_v1  ;;  %2834 = vmatprep.subr.mxu0 %v3799_v1 }
  0x4c   :  { %2792 = vmatmul.mubr.f32.vlgmr.msra.gmra.mrb[2].mxu1 %v3799_v1 }
  0x4d   :  { %3369 = vmatpush3.bf16.msra.mxu1 %v3880_v6  ;;  %2831 = vmatprep.mubr.msk.f32.mxu1 %vm3800_vm0, %v3799_v1 }
  0x4e   :  { %2797 = vmatmul.mubr.msk.f32.vlgmr.msra.gmra.mrb[2].mxu0 %vm163_vm2, %v3887_v9  ;;  %3370 = vmatprep.subr.bf16.mxu1 %v3798_v0 }
  0x4f   :  { %2835 = vmatpush3.msk.msra.mxu0 %vm167_vm1, %v3878_v5  ;;  %2836 = vmatprep.mubr.msk.f32.mxu0 %vm3800_vm0, %v3799_v1 }
  0x50   :  { %3391 = vmatprep.subr.bf16.mxu0 %v3798_v0 }
  0x51   :  { %3372 = vmatpush3.bf16.msra.mxu1 %v3894_v12 }
  0x52   :  { %2837 = vmatmul.mubr.msk.f32.vlgmr.msra.gmra.mrb[4].mxu0 %vm163_vm2, %v3920_v29  ;;  %3373 = vmatprep.subr.bf16.mxu1 %v3798_v0 }
  0x53   :  { %3393 = vmatpush3.bf16.msra.mxu0 %v3896_v13  ;;  %2871 = vmatprep.mubr.msk.f32.mxu0 %vm3800_vm0, %v3799_v1 }
  0x54   :  { %3394 = vmatprep.subr.bf16.mxu0 %v3798_v0 }
  0x55   :  { %3375 = vmatpush3.bf16.msra.mxu1 %v3907_v22 }
  0x56   :  { %3376 = vmatprep.subr.bf16.mxu1 %v3798_v0 }
  0x57   :  { %3396 = vmatpush3.bf16.msra.mxu0 %v3903_v19 }
  0x58   :  { %3397 = vmatprep.subr.bf16.mxu0 %v3798_v0 }
  0x59   :  { %3378 = vmatpush3.bf16.msra.mxu1 %v3915_v28 }
  0x5a   :  { %3379 = vmatprep.subr.bf16.mxu1 %v3798_v0 }
  0x5b   :  { %3399 = vmatpush3.bf16.msra.mxu0 %v3911_v25 }
  0x5c   :  { %3400 = vmatprep.subr.bf16.mxu0 %v3798_v0 }
  0x5d   :  { %3381 = vmatpush3.bf16.msra.mxu1 %v3941_v38 }
  0x5e   :  { %3382 = vmatprep.subr.bf16.mxu1 %v3798_v0 }
  0x5f   :  { %3402 = vmatpush3.bf16.msra.mxu0 %v3930_v33 }
  0x60   :  { %3403 = vmatprep.subr.bf16.mxu0 %v3798_v0 }
  0x61   :  { %3384 = vmatpush3.bf16.msra.mxu1 %v3951_v45 }
  0x62   :  { %3385 = vmatprep.subr.bf16.mxu1 %v3798_v0 }
  0x63   :  { %3405 = vmatpush3.bf16.msra.mxu0 %v3947_v42 }
  0x64   :  { %3406 = vmatprep.subr.bf16.mxu0 %v3798_v0 }
  0x65   :  { %3387 = vmatpush3.bf16.msra.mxu1 %v3960_v52 }
  0x66   :  { %3388 = vmatprep.subr.bf16.mxu1 %v3798_v0 }
  0x67   :  { %3408 = vmatpush3.bf16.msra.mxu0 %v3956_v49 }
  0x68   :  { %3409 = vmatprep.subr.bf16.mxu0 %v3798_v0 }
  0x69   :  { %3390 = vmatpush3.bf16.msra.mxu1 %v3968_v58 }
  0x6a   :  { %3415 = vmatprep.subr.bf16.mxu1 %v3798_v0 }
  0x6b   :  { %3411 = vmatpush3.bf16.msra.mxu0 %v3964_v55 }
  0x6c   :  { %3412 = vmatprep.subr.bf16.mxu0 %v3798_v0 }
  0x6f   :  { %3414 = vmatpush3.bf16.msra.mxu0 %v3972_v59 }
  0x70   :  { %2874 = vmatprep.subr.mxu0 %v3799_v1 }
  0xac   :  { %v4041_v4 = vpop.permute.xlu0 %406 }
  0xad   :  { %vm408_vm7 = vcmp.eq.s32.totalorder %v4041_v4, 1 }
  0xb0   :  { %v708_v53 = vpop.permute.xlu0 %707 }
  0xb1   :  { %vm709_vm12 = vcmp.eq.s32.totalorder %v708_v53, 1 }
  0xfe   :  { %v237_v61 = vpop.f32.mrb[0].mxu1 }
  0xff   :  { %v2758_v62 = vpop.f32.mrb[1].mxu1 }
 0x11c   :  { %v159_v3 = vpop.f32.mrb[0].mxu0 }
 0x11d   :  { %v238_v7 = vadd.f32 %v237_v61, %v159_v3  ;;  %v2753_v8 = vpop.f32.mrb[1].mxu0 }
 0x11f   :  { %v314_v9 = vpop.f32.mrb[2].mxu1  ;;  %v247_v10 = vadd.f32 %v4039_v63, %v238_v7 }
 0x120   :  { %v2793_v11 = vpop.f32.mrb[3].mxu1 }
 0x121   :  { %v387_v15 = vpop.f32.mrb[2].mxu0  ;;  %2832 = vmatmul.mubr.msk.f32.vlgmr.msra.gmra.mrb[4].mxu1 %vm408_vm7, %v247_v10  ;;  %2872 = vmatmul.mubr.msk.f32.vlgmr.msra.gmra.mrb[6].mxu0 %vm408_vm7, %v247_v10  ;;  %v4056_v18 = vsel %vm408_vm7, %v247_v10, 0.0 }
 0x122   :  { %v388_v16 = vadd.f32 %v387_v15, %v314_v9  ;;  %v2798_v17 = vpop.f32.mrb[3].mxu0  ;;  %2875 = vmatpush3.msk.msra.mxu0 %vm167_vm1, %v3980_v60  ;;  %2876 = vmatprep.mubr.msk.f32.mxu0 %vm3800_vm0, %v3799_v1 }
 0x123   :  { %2914 = vmatprep.subr.mxu0 %v3799_v1  ;;  %3417 = vmatpush3.bf16.msra.mxu1 %v3880_v6 }
 0x124   :  { %v397_v20 = vadd.f32 %v4048_v14, %v388_v16  ;;  %3418 = vmatprep.subr.bf16.mxu1 %v3798_v0  ;;  %2911 = vmatprep.mubr.msk.f32.mxu1 %vm3800_vm0, %v3799_v1  ;;  %v4206_v16 = vpop.permute.xlu1 %1008 }
 0x125   :  { %v4066_v21 = vpop.f32.mrb[4].mxu0  ;;  %2877 = vmatmul.mubr.msk.f32.vlgmr.msra.gmra.mrb[8].mxu0 %vm163_vm2, %v3920_v29  ;;  %vm1010_vm13 = vcmp.eq.s32.totalorder %v4206_v16, 1 }
 0x126   :  { %v398_v23 = vsub.f32 0.0, %v397_v20  ;;  %v2838_v24 = vpop.f32.mrb[5].mxu0  ;;  %2915 = vmatpush3.msk.msra.mxu0 %vm167_vm1, %v3878_v5  ;;  %2916 = vmatprep.mubr.msk.f32.mxu0 %vm3800_vm0, %v3799_v1 }
 0x127   :  { %3439 = vmatprep.subr.bf16.mxu0 %v3798_v0  ;;  %3420 = vmatpush3.bf16.msra.mxu1 %v3894_v12 }
 0x128   :  { %v399_v27 = vmul.f32 1.442695, %v398_v23  ;;  %3421 = vmatprep.subr.bf16.mxu1 %v3798_v0 }
 0x129   :  { %2917 = vmatmul.mubr.msk.f32.vlgmr.msra.gmra.mrb[10].mxu0 %vm163_vm2, %v4079_v26 }
 0x12a   :  { %3690 = vpow2.f32 %v399_v27  ;;  %3441 = vmatpush3.bf16.msra.mxu0 %v3896_v13  ;;  %2951 = vmatprep.mubr.msk.f32.mxu0 %vm3800_vm0, %v3799_v1 }
 0x12b   :  { %3442 = vmatprep.subr.bf16.mxu0 %v3798_v0  ;;  %3423 = vmatpush3.bf16.msra.mxu1 %v3907_v22 }
 0x12c   :  { %3424 = vmatprep.subr.bf16.mxu1 %v3798_v0 }
 0x12e   :  { %3444 = vmatpush3.bf16.msra.mxu0 %v3903_v19 }
 0x12f   :  { %3445 = vmatprep.subr.bf16.mxu0 %v3798_v0  ;;  %3426 = vmatpush3.bf16.msra.mxu1 %v3915_v28 }
 0x130   :  { %3427 = vmatprep.subr.bf16.mxu1 %v3798_v0 }
 0x132   :  { %3447 = vmatpush3.bf16.msra.mxu0 %v3911_v25 }
 0x133   :  { %3448 = vmatprep.subr.bf16.mxu0 %v3798_v0  ;;  %3429 = vmatpush3.bf16.msra.mxu1 %v3941_v38 }
 0x134   :  { %v3691_v29 = vpop.eup %3690  ;;  %3430 = vmatprep.subr.bf16.mxu1 %v3798_v0 }
 0x135   :  { %v401_v30 = vadd.f32 1.0, %v3691_v29 }
 0x136   :  { %3450 = vmatpush3.bf16.msra.mxu0 %v3930_v33 }
 0x137   :  { %3692 = vrcp.f32 %v401_v30  ;;  %3451 = vmatprep.subr.bf16.mxu0 %v3798_v0  ;;  %3432 = vmatpush3.bf16.msra.mxu1 %v3951_v45 }
 0x138   :  { %3433 = vmatprep.subr.bf16.mxu1 %v3798_v0 }
 0x13a   :  { %3453 = vmatpush3.bf16.msra.mxu0 %v3947_v42 }
 0x13b   :  { %3454 = vmatprep.subr.bf16.mxu0 %v3798_v0  ;;  %3435 = vmatpush3.bf16.msra.mxu1 %v3960_v52 }
 0x13c   :  { %3436 = vmatprep.subr.bf16.mxu1 %v3798_v0 }
 0x13e   :  { %3456 = vmatpush3.bf16.msra.mxu0 %v3956_v49 }
 0x13f   :  { %3457 = vmatprep.subr.bf16.mxu0 %v3798_v0  ;;  %3438 = vmatpush3.bf16.msra.mxu1 %v3968_v58 }
 0x140   :  { %3463 = vmatprep.subr.bf16.mxu1 %v3798_v0 }
 0x141   :  { %v3693_v31 = vpop.eup %3692 }
 0x142   :  { %v4114_v34 = vsel %vm408_vm7, %v3693_v31, 0.0  ;;  %3459 = vmatpush3.bf16.msra.mxu0 %v3964_v55 }
 0x143   :  { %3460 = vmatprep.subr.bf16.mxu0 %v3798_v0 }
 0x146   :  { %3462 = vmatpush3.bf16.msra.mxu0 %v3972_v59 }
 0x147   :  { %2954 = vmatprep.subr.mxu0 %v3799_v1 }
 0x1f4   :  { %v480_v46 = vpop.f32.mrb[4].mxu1  ;;  %v624_v47 = vpop.f32.mrb[6].mxu0 }
 0x1f5   :  { %v554_v48 = vadd.f32 %v4066_v21, %v480_v46  ;;  %v2833_v50 = vpop.f32.mrb[5].mxu1  ;;  %v2873_v51 = vpop.f32.mrb[7].mxu0 }
 0x1f7   :  { %v557_v54 = vadd.f32 %v4039_v63, %v554_v48 }
 0x1f8   :  { %v694_v56 = vpop.f32.mrb[8].mxu0 }
 0x1f9   :  { %v695_v57 = vadd.f32 %v694_v56, %v624_v47  ;;  %v4147_v61 = vsel %vm709_vm12, %v557_v54, %v4056_v18  ;;  %v2878_v62 = vpop.f32.mrb[9].mxu0  ;;  %v1310_v56 = vpop.permute.xlu1 %1309 }
 0x1fa   :  { %2912 = vmatmul.mubr.f32.vlgmr.msra.gmra.mrb[6].mxu1 %v4147_v61  ;;  %2952 = vmatmul.mubr.f32.vlgmr.msra.gmra.mrb[12].mxu0 %v4147_v61  ;;  %vm1311_vm14 = vcmp.eq.s32.totalorder %v1310_v56, 1 }
 0x1fb   :  { %v698_v2 = vadd.f32 %v4048_v14, %v695_v57  ;;  %2955 = vmatpush3.msk.msra.mxu0 %vm167_vm1, %v3980_v60  ;;  %2956 = vmatprep.mubr.msk.f32.mxu0 %vm3800_vm0, %v3799_v1 }
 0x1fc   :  { %2994 = vmatprep.subr.mxu0 %v3799_v1  ;;  %3465 = vmatpush3.bf16.msra.mxu1 %v3880_v6  ;;  %v854_v3 = vpop.f32.mrb[10].mxu0 }
 0x1fd   :  { %v699_v4 = vsub.f32 0.0, %v698_v2  ;;  %3466 = vmatprep.subr.bf16.mxu1 %v3798_v0  ;;  %v2918_v7 = vpop.f32.mrb[11].mxu0  ;;  %2991 = vmatprep.mubr.msk.f32.mxu1 %vm3800_vm0, %v3799_v1 }
 0x1fe   :  { %2957 = vmatmul.mubr.msk.f32.vlgmr.msra.gmra.mrb[14].mxu0 %vm163_vm2, %v4079_v26 }
 0x1ff   :  { %v700_v8 = vmul.f32 1.442695, %v699_v4  ;;  %2995 = vmatpush3.msk.msra.mxu0 %vm167_vm1, %v3878_v5  ;;  %2996 = vmatprep.mubr.msk.f32.mxu0 %vm3800_vm0, %v3799_v1 }
 0x200   :  { %3487 = vmatprep.subr.bf16.mxu0 %v3798_v0  ;;  %3468 = vmatpush3.bf16.msra.mxu1 %v3894_v12 }
 0x201   :  { %3694 = vpow2.f32 %v700_v8  ;;  %3469 = vmatprep.subr.bf16.mxu1 %v3798_v0 }
 0x202   :  { %2997 = vmatmul.mubr.msk.f32.vlgmr.msra.gmra.mrb[16].mxu0 %vm163_vm2, %v4124_v36 }
 0x203   :  { %3489 = vmatpush3.bf16.msra.mxu0 %v3896_v13  ;;  %3031 = vmatprep.mubr.msk.f32.mxu0 %vm3800_vm0, %v3799_v1 }
 0x204   :  { %3490 = vmatprep.subr.bf16.mxu0 %v3798_v0  ;;  %3471 = vmatpush3.bf16.msra.mxu1 %v3907_v22 }
 0x205   :  { %3472 = vmatprep.subr.bf16.mxu1 %v3798_v0 }
 0x207   :  { %3492 = vmatpush3.bf16.msra.mxu0 %v3903_v19 }
 0x208   :  { %3493 = vmatprep.subr.bf16.mxu0 %v3798_v0  ;;  %3474 = vmatpush3.bf16.msra.mxu1 %v3915_v28 }
 0x209   :  { %3475 = vmatprep.subr.bf16.mxu1 %v3798_v0 }
 0x20b   :  { %v3695_v9 = vpop.eup %3694  ;;  %3495 = vmatpush3.bf16.msra.mxu0 %v3911_v25 }
 0x20c   :  { %v702_v10 = vadd.f32 1.0, %v3695_v9  ;;  %3496 = vmatprep.subr.bf16.mxu0 %v3798_v0  ;;  %3477 = vmatpush3.bf16.msra.mxu1 %v3941_v38 }
 0x20d   :  { %3478 = vmatprep.subr.bf16.mxu1 %v3798_v0 }
 0x20e   :  { %3696 = vrcp.f32 %v702_v10 }
 0x20f   :  { %3498 = vmatpush3.bf16.msra.mxu0 %v3930_v33 }
 0x210   :  { %3499 = vmatprep.subr.bf16.mxu0 %v3798_v0  ;;  %3480 = vmatpush3.bf16.msra.mxu1 %v3951_v45 }
 0x211   :  { %3481 = vmatprep.subr.bf16.mxu1 %v3798_v0 }
 0x213   :  { %3501 = vmatpush3.bf16.msra.mxu0 %v3947_v42 }
 0x214   :  { %3502 = vmatprep.subr.bf16.mxu0 %v3798_v0  ;;  %3483 = vmatpush3.bf16.msra.mxu1 %v3960_v52 }
 0x215   :  { %3484 = vmatprep.subr.bf16.mxu1 %v3798_v0 }
 0x217   :  { %3504 = vmatpush3.bf16.msra.mxu0 %v3956_v49 }
 0x218   :  { %v3697_v11 = vpop.eup %3696  ;;  %3505 = vmatprep.subr.bf16.mxu0 %v3798_v0  ;;  %3486 = vmatpush3.bf16.msra.mxu1 %v3968_v58 }
 0x219   :  { %3511 = vmatprep.subr.bf16.mxu1 %v3798_v0  ;;  %v4200_v15 = vsel %vm709_vm12, %v3697_v11, %v4114_v34 }
 0x21b   :  { %3507 = vmatpush3.bf16.msra.mxu0 %v3964_v55 }
 0x21c   :  { %3508 = vmatprep.subr.bf16.mxu0 %v3798_v0 }
 0x21f   :  { %3510 = vmatpush3.bf16.msra.mxu0 %v3972_v59 }
 0x220   :  { %3034 = vmatprep.subr.mxu0 %v3799_v1 }
 0x2cd   :  { %v781_v17 = vpop.f32.mrb[6].mxu1  ;;  %v925_v18 = vpop.f32.mrb[12].mxu0 }
 0x2ce   :  { %v855_v20 = vadd.f32 %v854_v3, %v781_v17  ;;  %v2913_v21 = vpop.f32.mrb[7].mxu1  ;;  %v2953_v23 = vpop.f32.mrb[13].mxu0 }
 0x2d0   :  { %v858_v24 = vadd.f32 %v4039_v63, %v855_v20 }
 0x2d1   :  { %v995_v26 = vpop.f32.mrb[14].mxu0 }
 0x2d2   :  { %v996_v27 = vadd.f32 %v995_v26, %v925_v18  ;;  %v4213_v29 = vsel %vm1010_vm13, %v858_v24, %v4147_v61  ;;  %v2958_v30 = vpop.f32.mrb[15].mxu0  ;;  %v1611_v24 = vpop.permute.xlu0 %1610 }
 0x2d3   :  { %2992 = vmatmul.mubr.f32.vlgmr.msra.gmra.mrb[8].mxu1 %v4213_v29  ;;  %3032 = vmatmul.mubr.f32.vlgmr.msra.gmra.mrb[18].mxu0 %v4213_v29  ;;  %vm1612_vm15 = vcmp.eq.s32.totalorder %v1611_v24, 1 }
 0x2d4   :  { %v999_v31 = vadd.f32 %v4048_v14, %v996_v27  ;;  %3035 = vmatpush3.msk.msra.mxu0 %vm167_vm1, %v3980_v60  ;;  %3036 = vmatprep.mubr.msk.f32.mxu0 %vm3800_vm0, %v3799_v1 }
 0x2d5   :  { %3074 = vmatprep.subr.mxu0 %v3799_v1  ;;  %3513 = vmatpush3.bf16.msra.mxu1 %v3880_v6  ;;  %v1155_v34 = vpop.f32.mrb[16].mxu0 }
 0x2d6   :  { %v1000_v37 = vsub.f32 0.0, %v999_v31  ;;  %3514 = vmatprep.subr.bf16.mxu1 %v3798_v0  ;;  %v2998_v40 = vpop.f32.mrb[17].mxu0  ;;  %3071 = vmatprep.mubr.msk.f32.mxu1 %vm3800_vm0, %v3799_v1 }
 0x2d7   :  { %3037 = vmatmul.mubr.msk.f32.vlgmr.msra.gmra.mrb[20].mxu0 %vm163_vm2, %v4124_v36 }
 0x2d8   :  { %v1001_v43 = vmul.f32 1.442695, %v1000_v37  ;;  %3075 = vmatpush3.msk.msra.mxu0 %vm167_vm1, %v3878_v5  ;;  %3076 = vmatprep.mubr.msk.f32.mxu0 %vm3800_vm0, %v3799_v1 }
 0x2d9   :  { %3535 = vmatprep.subr.bf16.mxu0 %v3798_v0  ;;  %3516 = vmatpush3.bf16.msra.mxu1 %v3894_v12 }
 0x2da   :  { %3698 = vpow2.f32 %v1001_v43  ;;  %3517 = vmatprep.subr.bf16.mxu1 %v3798_v0 }
 0x2db   :  { %3077 = vmatmul.mubr.msk.f32.vlgmr.msra.gmra.mrb[22].mxu0 %vm163_vm2, %v3927_v32 }
 0x2dc   :  { %3537 = vmatpush3.bf16.msra.mxu0 %v3896_v13  ;;  %3111 = vmatprep.mubr.msk.f32.mxu0 %vm3800_vm0, %v3799_v1 }
 0x2dd   :  { %3538 = vmatprep.subr.bf16.mxu0 %v3798_v0  ;;  %3519 = vmatpush3.bf16.msra.mxu1 %v3907_v22 }
 0x2de   :  { %3520 = vmatprep.subr.bf16.mxu1 %v3798_v0 }
 0x2e0   :  { %3540 = vmatpush3.bf16.msra.mxu0 %v3903_v19 }
 0x2e1   :  { %3541 = vmatprep.subr.bf16.mxu0 %v3798_v0  ;;  %3522 = vmatpush3.bf16.msra.mxu1 %v3915_v28 }
 0x2e2   :  { %3523 = vmatprep.subr.bf16.mxu1 %v3798_v0 }
 0x2e4   :  { %v3699_v36 = vpop.eup %3698  ;;  %3543 = vmatpush3.bf16.msra.mxu0 %v3911_v25 }
 0x2e5   :  { %v1003_v44 = vadd.f32 1.0, %v3699_v36  ;;  %3544 = vmatprep.subr.bf16.mxu0 %v3798_v0  ;;  %3525 = vmatpush3.bf16.msra.mxu1 %v3941_v38 }
 0x2e6   :  { %3526 = vmatprep.subr.bf16.mxu1 %v3798_v0 }
 0x2e7   :  { %3700 = vrcp.f32 %v1003_v44  ;;  %v1912_v44 = vpop.permute.xlu1 %1911 }
 0x2e8   :  { %3546 = vmatpush3.bf16.msra.mxu0 %v3930_v33  ;;  %vm1913_vm3 = vcmp.eq.s32.totalorder %v1912_v44, 1 }
 0x2e9   :  { %3547 = vmatprep.subr.bf16.mxu0 %v3798_v0  ;;  %3528 = vmatpush3.bf16.msra.mxu1 %v3951_v45 }
 0x2ea   :  { %3529 = vmatprep.subr.bf16.mxu1 %v3798_v0 }
 0x2eb   :  { %v2373_v24 = vpop.permute.xlu1 %2372 }
 0x2ec   :  { %3549 = vmatpush3.bf16.msra.mxu0 %v3947_v42 }
 0x2ed   :  { %3550 = vmatprep.subr.bf16.mxu0 %v3798_v0  ;;  %3531 = vmatpush3.bf16.msra.mxu1 %v3960_v52 }
 0x2ee   :  { %3532 = vmatprep.subr.bf16.mxu1 %v3798_v0 }
 0x2f0   :  { %3552 = vmatpush3.bf16.msra.mxu0 %v3956_v49 }
 0x2f1   :  { %v3701_v46 = vpop.eup %3700  ;;  %3553 = vmatprep.subr.bf16.mxu0 %v3798_v0  ;;  %3534 = vmatpush3.bf16.msra.mxu1 %v3968_v58 }
 0x2f2   :  { %3114 = vmatprep.subr.mxu1 %v3799_v1  ;;  %v4267_v47 = vsel %vm1010_vm13, %v3701_v46, %v4200_v15 }
 0x2f4   :  { %3555 = vmatpush3.bf16.msra.mxu0 %v3964_v55 }
 0x2f5   :  { %3556 = vmatprep.subr.bf16.mxu0 %v3798_v0 }
 0x2f8   :  { %3558 = vmatpush3.bf16.msra.mxu0 %v3972_v59 }
 0x2f9   :  { %3154 = vmatprep.subr.mxu0 %v3799_v1 }
 0x3a6   :  { %v1082_v48 = vpop.f32.mrb[8].mxu1  ;;  %v1226_v50 = vpop.f32.mrb[18].mxu0 }
 0x3a7   :  { %v1156_v51 = vadd.f32 %v1155_v34, %v1082_v48  ;;  %v2993_v53 = vpop.f32.mrb[9].mxu1  ;;  %v3033_v54 = vpop.f32.mrb[19].mxu0 }
 0x3a9   :  { %v1159_v57 = vadd.f32 %v4039_v63, %v1156_v51 }
 0x3aa   :  { %v1296_v61 = vpop.f32.mrb[20].mxu0 }
 0x3ab   :  { %v1297_v62 = vadd.f32 %v1296_v61, %v1226_v50  ;;  %v4276_v2 = vsel %vm1311_vm14, %v1159_v57, %v4213_v29  ;;  %v3038_v3 = vpop.f32.mrb[21].mxu0 }
 0x3ac   :  { %3072 = vmatmul.mubr.f32.vlgmr.msra.gmra.mrb[10].mxu1 %v4276_v2  ;;  %3112 = vmatmul.mubr.f32.vlgmr.msra.gmra.mrb[24].mxu0 %v4276_v2 }
 0x3ad   :  { %v1300_v4 = vadd.f32 %v4048_v14, %v1297_v62  ;;  %3115 = vmatpush3.msk.msra.mxu1 %vm167_vm1, %v3980_v60  ;;  %3116 = vmatprep.mubr.msk.f32.mxu1 %vm3800_vm0, %v3799_v1 }
 0x3ae   :  { %3155 = vmatpush3.msk.msra.mxu0 %vm167_vm1, %v3878_v5  ;;  %3559 = vmatprep.subr.bf16.mxu1 %v3798_v0  ;;  %v1456_v7 = vpop.f32.mrb[22].mxu0 }
 0x3af   :  { %v1301_v8 = vsub.f32 0.0, %v1300_v4  ;;  %3156 = vmatprep.mubr.msk.f32.mxu0 %vm3800_vm0, %v3799_v1  ;;  %3583 = vmatprep.subr.bf16.mxu0 %v3798_v0  ;;  %v3078_v9 = vpop.f32.mrb[23].mxu0 }
 0x3b0   :  { %3117 = vmatmul.mubr.msk.f32.vlgmr.msra.gmra.mrb[12].mxu1 %vm163_vm2, %v3927_v32  ;;  %3157 = vmatmul.mubr.msk.f32.vlgmr.msra.gmra.mrb[26].mxu0 %vm163_vm2, %v4131_v39 }
 0x3b1   :  { %v1302_v10 = vmul.f32 1.442695, %v1301_v8  ;;  %3561 = vmatpush3.bf16.msra.mxu1 %v3880_v6  ;;  %3585 = vmatpush3.bf16.msra.mxu0 %v3896_v13 }
 0x3b2   :  { %3562 = vmatprep.subr.bf16.mxu1 %v3798_v0  ;;  %3586 = vmatprep.subr.bf16.mxu0 %v3798_v0 }
 0x3b3   :  { %3702 = vpow2.f32 %v1302_v10  ;;  %3151 = vmatprep.mubr.msk.f32.mxu1 %vm3800_vm0, %v3799_v1  ;;  %3191 = vmatprep.mubr.msk.f32.mxu0 %vm3800_vm0, %v3799_v1 }
 0x3b5   :  { %3564 = vmatpush3.bf16.msra.mxu1 %v3894_v12  ;;  %3588 = vmatpush3.bf16.msra.mxu0 %v3903_v19 }
 0x3b6   :  { %3565 = vmatprep.subr.bf16.mxu1 %v3798_v0  ;;  %3589 = vmatprep.subr.bf16.mxu0 %v3798_v0 }
 0x3b9   :  { %3567 = vmatpush3.bf16.msra.mxu1 %v3907_v22  ;;  %3591 = vmatpush3.bf16.msra.mxu0 %v3911_v25 }
 0x3ba   :  { %3568 = vmatprep.subr.bf16.mxu1 %v3798_v0  ;;  %3592 = vmatprep.subr.bf16.mxu0 %v3798_v0 }
 0x3bd   :  { %v3703_v32 = vpop.eup %3702  ;;  %3570 = vmatpush3.bf16.msra.mxu1 %v3915_v28  ;;  %3594 = vmatpush3.bf16.msra.mxu0 %v3930_v33 }
 0x3be   :  { %v1304_v11 = vadd.f32 1.0, %v3703_v32  ;;  %3571 = vmatprep.subr.bf16.mxu1 %v3798_v0  ;;  %3595 = vmatprep.subr.bf16.mxu0 %v3798_v0 }
 0x3c0   :  { %3704 = vrcp.f32 %v1304_v11 }
 0x3c1   :  { %3573 = vmatpush3.bf16.msra.mxu1 %v3941_v38  ;;  %3597 = vmatpush3.bf16.msra.mxu0 %v3947_v42 }
 0x3c2   :  { %3574 = vmatprep.subr.bf16.mxu1 %v3798_v0  ;;  %3598 = vmatprep.subr.bf16.mxu0 %v3798_v0 }
 0x3c5   :  { %3576 = vmatpush3.bf16.msra.mxu1 %v3951_v45  ;;  %3600 = vmatpush3.bf16.msra.mxu0 %v3956_v49 }
 0x3c6   :  { %3577 = vmatprep.subr.bf16.mxu1 %v3798_v0  ;;  %3601 = vmatprep.subr.bf16.mxu0 %v3798_v0 }
 0x3c9   :  { %3579 = vmatpush3.bf16.msra.mxu1 %v3960_v52  ;;  %3603 = vmatpush3.bf16.msra.mxu0 %v3964_v55 }
 0x3ca   :  { %v3705_v15 = vpop.eup %3704  ;;  %3580 = vmatprep.subr.bf16.mxu1 %v3798_v0  ;;  %3604 = vmatprep.subr.bf16.mxu0 %v3798_v0 }
 0x3cb   :  { %v4329_v16 = vsel %vm1311_vm14, %v3705_v15, %v4267_v47 }
 0x3cd   :  { %3582 = vmatpush3.bf16.msra.mxu1 %v3968_v58  ;;  %3606 = vmatpush3.bf16.msra.mxu0 %v3972_v59 }
 0x3ce   :  { %3194 = vmatprep.subr.mxu1 %v3799_v1  ;;  %3234 = vmatprep.subr.mxu0 %v3799_v1 }
 0x47f   :  { %v1383_v17 = vpop.f32.mrb[10].mxu1  ;;  %v1527_v18 = vpop.f32.mrb[24].mxu0 }
 0x480   :  { %v1457_v20 = vadd.f32 %v1456_v7, %v1383_v17  ;;  %v3073_v21 = vpop.f32.mrb[11].mxu1  ;;  %v3113_v23 = vpop.f32.mrb[25].mxu0 }
 0x482   :  { %v1460_v26 = vadd.f32 %v4039_v63, %v1457_v20 }
 0x483   :  { %v1597_v27 = vpop.f32.mrb[12].mxu1  ;;  %v1757_v29 = vpop.f32.mrb[26].mxu0 }
 0x484   :  { %v1598_v30 = vadd.f32 %v1597_v27, %v1527_v18  ;;  %v4338_v31 = vsel %vm1612_vm15, %v1460_v26, %v4276_v2  ;;  %v3118_v34 = vpop.f32.mrb[13].mxu1  ;;  %v3158_v37 = vpop.f32.mrb[27].mxu0 }
 0x485   :  { %3152 = vmatmul.mubr.f32.vlgmr.msra.gmra.mrb[14].mxu1 %v4338_v31  ;;  %3192 = vmatmul.mubr.f32.vlgmr.msra.gmra.mrb[28].mxu0 %v4338_v31 }
 0x486   :  { %v1601_v40 = vadd.f32 %v4048_v14, %v1598_v30  ;;  %3195 = vmatpush3.msk.msra.mxu1 %vm167_vm1, %v3980_v60  ;;  %3196 = vmatprep.mubr.msk.f32.mxu1 %vm3800_vm0, %v3799_v1 }
 0x487   :  { %3235 = vmatpush3.msk.msra.mxu0 %vm167_vm1, %v3878_v5  ;;  %3607 = vmatprep.subr.bf16.mxu1 %v3798_v0 }
 0x488   :  { %v1602_v43 = vsub.f32 0.0, %v1601_v40  ;;  %3236 = vmatprep.mubr.msk.f32.mxu0 %vm3800_vm0, %v3799_v1  ;;  %3631 = vmatprep.subr.bf16.mxu0 %v3798_v0 }
 0x489   :  { %3197 = vmatmul.mubr.msk.f32.vlgmr.msra.gmra.mrb[16].mxu1 %vm163_vm2, %v4131_v39  ;;  %3237 = vmatmul.mubr.msk.f32.vlgmr.msra.gmra.mrb[30].mxu0 %vm163_vm2, %v3937_v35 }
 0x48a   :  { %v1603_v36 = vmul.f32 1.442695, %v1602_v43  ;;  %3609 = vmatpush3.bf16.msra.mxu1 %v3880_v6  ;;  %3633 = vmatpush3.bf16.msra.mxu0 %v3896_v13 }
 0x48b   :  { %3610 = vmatprep.subr.bf16.mxu1 %v3798_v0  ;;  %3634 = vmatprep.subr.bf16.mxu0 %v3798_v0 }
 0x48c   :  { %3706 = vpow2.f32 %v1603_v36  ;;  %3231 = vmatprep.mubr.msk.f32.mxu1 %vm3800_vm0, %v3799_v1  ;;  %3271 = vmatprep.mubr.msk.f32.mxu0 %vm3800_vm0, %v3799_v1 }
 0x48e   :  { %3612 = vmatpush3.bf16.msra.mxu1 %v3894_v12  ;;  %3636 = vmatpush3.bf16.msra.mxu0 %v3903_v19 }
 0x48f   :  { %3613 = vmatprep.subr.bf16.mxu1 %v3798_v0  ;;  %3637 = vmatprep.subr.bf16.mxu0 %v3798_v0 }
 0x492   :  { %3615 = vmatpush3.bf16.msra.mxu1 %v3907_v22  ;;  %3639 = vmatpush3.bf16.msra.mxu0 %v3911_v25 }
 0x493   :  { %3616 = vmatprep.subr.bf16.mxu1 %v3798_v0  ;;  %3640 = vmatprep.subr.bf16.mxu0 %v3798_v0 }
 0x496   :  { %v3707_v5 = vpop.eup %3706  ;;  %3618 = vmatpush3.bf16.msra.mxu1 %v3915_v28  ;;  %3642 = vmatpush3.bf16.msra.mxu0 %v3930_v33 }
 0x497   :  { %v1605_v6 = vadd.f32 1.0, %v3707_v5  ;;  %3619 = vmatprep.subr.bf16.mxu1 %v3798_v0  ;;  %3643 = vmatprep.subr.bf16.mxu0 %v3798_v0 }
 0x499   :  { %3708 = vrcp.f32 %v1605_v6 }
 0x49a   :  { %3621 = vmatpush3.bf16.msra.mxu1 %v3941_v38  ;;  %3645 = vmatpush3.bf16.msra.mxu0 %v3947_v42 }
 0x49b   :  { %3622 = vmatprep.subr.bf16.mxu1 %v3798_v0  ;;  %3646 = vmatprep.subr.bf16.mxu0 %v3798_v0 }
 0x49e   :  { %3624 = vmatpush3.bf16.msra.mxu1 %v3951_v45  ;;  %3648 = vmatpush3.bf16.msra.mxu0 %v3956_v49 }
 0x49f   :  { %3625 = vmatprep.subr.bf16.mxu1 %v3798_v0  ;;  %3649 = vmatprep.subr.bf16.mxu0 %v3798_v0 }
 0x4a2   :  { %3627 = vmatpush3.bf16.msra.mxu1 %v3960_v52  ;;  %3651 = vmatpush3.bf16.msra.mxu0 %v3964_v55 }
 0x4a3   :  { %v3709_v12 = vpop.eup %3708  ;;  %3628 = vmatprep.subr.bf16.mxu1 %v3798_v0  ;;  %3652 = vmatprep.subr.bf16.mxu0 %v3798_v0 }
 0x4a4   :  { %v1614_v22 = vsel %vm1612_vm15, %v3709_v12, %v4329_v16 }
 0x4a6   :  { %3630 = vmatpush3.bf16.msra.mxu1 %v3968_v58  ;;  %3654 = vmatpush3.bf16.msra.mxu0 %v3972_v59 }
 0x4a7   :  { %3274 = vmatprep.subr.mxu1 %v3799_v1  ;;  %3314 = vmatprep.subr.mxu0 %v3799_v1 }
 0x558   :  { %v1684_v28 = vpop.f32.mrb[14].mxu1  ;;  %v1828_v38 = vpop.f32.mrb[28].mxu0 }
 0x559   :  { %v1758_v45 = vadd.f32 %v1757_v29, %v1684_v28  ;;  %v3153_v52 = vpop.f32.mrb[15].mxu1  ;;  %v3193_v39 = vpop.f32.mrb[29].mxu0 }
 0x55b   :  { %v1761_v46 = vadd.f32 %v4039_v63, %v1758_v45 }
 0x55c   :  { %v1898_v47 = vpop.f32.mrb[16].mxu1  ;;  %v2058_v48 = vpop.f32.mrb[30].mxu0 }
 0x55d   :  { %v1899_v50 = vadd.f32 %v1898_v47, %v1828_v38  ;;  %v1914_v58 = vsel %vm1913_vm3, %v1761_v46, %v4338_v31  ;;  %v3198_v51 = vpop.f32.mrb[17].mxu1  ;;  %v3238_v53 = vpop.f32.mrb[31].mxu0 }
 0x55e   :  { %3232 = vmatmul.mubr.f32.vlgmr.msra.gmra.mrb[18].mxu1 %v1914_v58  ;;  %3272 = vmatmul.mubr.f32.vlgmr.msra.gmra.mrb[32].mxu0 %v1914_v58 }
 0x55f   :  { %v1902_v54 = vadd.f32 %v4048_v14, %v1899_v50  ;;  %3275 = vmatpush3.msk.msra.mxu1 %vm167_vm1, %v3980_v60  ;;  %3276 = vmatprep.mubr.msk.f32.mxu1 %vm3800_vm0, %v3799_v1 }
 0x560   :  { %3655 = vmatprep.subr.bf16.mxu1 %v3798_v0  ;;  %3315 = vmatpush3.msk.msra.mxu0 %vm167_vm1, %v3980_v60  ;;  %vm2374_vm1 = vcmp.eq.s32.totalorder %v2373_v24, 1 }
 0x561   :  { %v1903_v56 = vsub.f32 0.0, %v1902_v54  ;;  %3316 = vmatprep.mubr.msk.f32.mxu0 %vm3800_vm0, %v3799_v1 }
 0x562   :  { %3277 = vmatmul.mubr.msk.f32.vlgmr.msra.gmra.mrb[20].mxu1 %vm163_vm2, %v3937_v35  ;;  %3317 = vmatmul.mubr.msk.f32.vlgmr.msra.gmra.mrb[34].mxu0 %vm163_vm2, %v4138_v41 }
 0x563   :  { %v1904_v57 = vmul.f32 1.442695, %v1903_v56  ;;  %3657 = vmatpush3.bf16.msra.mxu1 %v3896_v13  ;;  %3311 = vmatprep.mubr.msk.f32.mxu1 %vm3800_vm0, %v3799_v1 }
 0x564   :  { %3658 = vmatprep.subr.bf16.mxu1 %v3798_v0 }
 0x565   :  { %3710 = vpow2.f32 %v1904_v57 }
 0x567   :  { %3660 = vmatpush3.bf16.msra.mxu1 %v3903_v19  ;;  %v2213_v19 = vpop.permute.xlu0 %2212 }
 0x568   :  { %3661 = vmatprep.subr.bf16.mxu1 %v3798_v0  ;;  %vm2214_vm0 = vcmp.eq.s32.totalorder %v2213_v19, 1 }
 0x56b   :  { %3663 = vmatpush3.bf16.msra.mxu1 %v3911_v25 }
 0x56c   :  { %3664 = vmatprep.subr.bf16.mxu1 %v3798_v0 }
 0x56f   :  { %v3711_v35 = vpop.eup %3710  ;;  %3666 = vmatpush3.bf16.msra.mxu1 %v3930_v33 }
 0x570   :  { %v1906_v60 = vadd.f32 1.0, %v3711_v35  ;;  %3667 = vmatprep.subr.bf16.mxu1 %v3798_v0 }
 0x572   :  { %3712 = vrcp.f32 %v1906_v60 }
 0x573   :  { %3669 = vmatpush3.bf16.msra.mxu1 %v3947_v42 }
 0x574   :  { %3670 = vmatprep.subr.bf16.mxu1 %v3798_v0 }
 0x577   :  { %3672 = vmatpush3.bf16.msra.mxu1 %v3956_v49 }
 0x578   :  { %3673 = vmatprep.subr.bf16.mxu1 %v3798_v0 }
 0x57b   :  { %3675 = vmatpush3.bf16.msra.mxu1 %v3964_v55 }
 0x57c   :  { %v3713_v1 = vpop.eup %3712  ;;  %3676 = vmatprep.subr.bf16.mxu1 %v3798_v0 }
 0x57d   :  { %v1915_v13 = vsel %vm1913_vm3, %v3713_v1, %v1614_v22 }
 0x57f   :  { %3678 = vmatpush3.bf16.msra.mxu1 %v3972_v59 }
 0x631   :  { %v1985_v25 = vpop.f32.mrb[18].mxu1  ;;  %v2129_v33 = vpop.f32.mrb[32].mxu0 }
 0x632   :  { %v2059_v41 = vadd.f32 %v2058_v48, %v1985_v25  ;;  %v3233_v42 = vpop.f32.mrb[19].mxu1  ;;  %v3273_v61 = vpop.f32.mrb[33].mxu0 }
 0x634   :  { %v2062_v62 = vadd.f32 %v4039_v63, %v2059_v41 }
 0x635   :  { %v2199_v49 = vpop.f32.mrb[20].mxu1  ;;  %v2359_v2 = vpop.f32.mrb[34].mxu0 }
 0x636   :  { %v2200_v3 = vadd.f32 %v2199_v49, %v2129_v33  ;;  %v2215_v55 = vsel %vm2214_vm0, %v2062_v62, %v1914_v58  ;;  %v3278_v4 = vpop.f32.mrb[21].mxu1  ;;  %v3318_v0 = vpop.f32.mrb[35].mxu0 }
 0x637   :  { %3312 = vmatmul.mubr.f32.vlgmr.msra.gmra.mrb[22].mxu1 %v2215_v55 }
 0x638   :  { %v2203_v7 = vadd.f32 %v4048_v14, %v2200_v3 }
 0x63a   :  { %v2204_v59 = vsub.f32 0.0, %v2203_v7 }
 0x63c   :  { %v2205_v8 = vmul.f32 1.442695, %v2204_v59 }
 0x63e   :  { %3714 = vpow2.f32 %v2205_v8 }
 0x648   :  { %v3715_v9 = vpop.eup %3714 }
 0x649   :  { %v2207_v10 = vadd.f32 1.0, %v3715_v9 }
 0x64b   :  { %3716 = vrcp.f32 %v2207_v10 }
 0x655   :  { %v3717_v32 = vpop.eup %3716 }
 0x656   :  { %v2216_v63 = vsel %vm2214_vm0, %v3717_v32, %v1915_v13 }
 0x70a   :  { %v2286_v11 = vpop.f32.mrb[22].mxu1 }
 0x70b   :  { %v2360_v15 = vadd.f32 %v2359_v2, %v2286_v11  ;;  %v3313_v16 = vpop.f32.mrb[23].mxu1 }
 0x70d   :  { %v2363_v17 = vadd.f32 %v4048_v14, %v2360_v15 }
 0x70f   :  { %v2364_v18 = vsub.f32 0.0, %v2363_v17 }
 0x711   :  { %v2365_v20 = vmul.f32 1.442695, %v2364_v18 }
 0x713   :  { %3718 = vpow2.f32 %v2365_v20 }
 0x71d   :  { %v3719_v21 = vpop.eup %3718 }
 0x71e   :  { %v2367_v23 = vadd.f32 1.0, %v3719_v21 }
 0x720   :  { %3720 = vrcp.f32 %v2367_v23 }
 0x72a   :  { %v3721_v26 = vpop.eup %3720 }
 0x72b   :  { %v2375_v27 = vsel %vm2374_vm1, %v3721_v26, %v2216_v63 }
 0x72c   :  { %2376 = vst [vmem:[#allocation7] sm:$0xff] %v2375_v27 }
 0x72d   :  { %3777 = shalt.err (!%p3774_p6)
}
 0x72e   :  { %s3778_s25 = scalar_lea.hbm %s4454_s7, 128 }
 0x72f   :  { %p3779_p7 = scmp.ne.s32.totalorder %s4454_s7, %s3778_s25  ;;  %p3782_p8 = scmp.lt.u32.totalorder %s3778_s25, %s4454_s7 }
 0x731   :  { %p3784_p9 = pnand %p3782_p8, %p3779_p7 }
 0x733   :  { %3787 = shalt.err (!%p3784_p9)
}
 0x734   :  { %2386 = dma.vmem_to_hbm [thread:$0]  %s2384_s22, 128, %s4454_s7, [#allocation4]  }
 0x735   :  { %3792 = dma.done.wait [#allocation4], 128  }
 0x736   :  { %3793 = vsyncadd [#allocation4], 4294967168 }
 0x737   :  { %2390 = vsyncpa [#allocation3], 1 }
 0x738   :  { %2391 = vsyncpa [#allocation6], 1 }
 0x739   :  { %2392 = vsyncpa [#allocation4], 1 }

</bundles_post_ra>
